<compile_context>
chip_gen: v7x
topology: tpu7x:2x2x1
jax: 0.10.0
libtpu: 0.0.40
codegen_flags: <defaults>
</compile_context>

<pallas_src>
import jax
import jax.numpy as jnp
from jax import lax
from jax.experimental import pallas as pl
from jax.experimental.pallas import tpu as pltpu


# --------------------------------------------------------------------------
# Fused decoder kernel
# --------------------------------------------------------------------------
def _make_decoder_kernel(n_outs, seq, emb, elus, n_layers):
    """Builds the fused SpiralDecoder kernel (one batch element per grid step)."""

    def kernel(*refs):
        x_ref = refs[0]
        o_ref = refs[-1]
        h = x_ref[0]                                           # (n_in, emb) bf16
        for l in range(n_layers):
            g_ref, w_ref, b_ref = refs[1 + 3 * l: 4 + 3 * l]
            n_out = n_outs[l]

            # Pool + spiral gather for all taps at once:
            #   (seq*n_out, n_in) @ (n_in, emb) -> (seq*n_out, emb), fp32 accum.
            y = jnp.dot(g_ref[...], h, preferred_element_type=jnp.float32)
            yb = y.astype(jnp.bfloat16)

            # SpiralConv linear: per-tap (n_out, emb) @ (emb, emb), fp32 accum.
            acc = jnp.zeros((n_out, emb), jnp.float32)
            for s in range(seq):
                acc = acc + jnp.dot(yb[s * n_out:(s + 1) * n_out, :], w_ref[s],
                                    preferred_element_type=jnp.float32)
            acc = acc + b_ref[...]                              # fp32 bias

            if elus[l]:                                         # ELU (alpha=1), fp32
                acc = jnp.where(acc > 0.0, acc,
                                jnp.exp(jnp.minimum(acc, 0.0)) - 1.0)

            h = acc.astype(jnp.bfloat16) if l + 1 < n_layers else acc

        o_ref[0] = h.astype(o_ref.dtype)

    return kernel


def spiral_decoder_forward(x, Gs, Wts, Bs, n_outs, elus):
    """x: (B, n_in0, emb) f32  ->  (B, n_outs[-1], emb) f32."""
    B, n_in0, emb = x.shape
    n_layers = len(Gs)
    seq = Wts[0].shape[0]
    n_final = n_outs[-1]

    kernel = _make_decoder_kernel(tuple(n_outs), seq, emb, tuple(elus), n_layers)

    in_specs = [pl.BlockSpec((1, n_in0, emb), lambda b: (b, 0, 0))]
    operands = [x.astype(jnp.bfloat16)]
    for G, Wt, bias in zip(Gs, Wts, Bs):
        in_specs.append(pl.BlockSpec(G.shape, lambda b: (0, 0)))      # resident
        in_specs.append(pl.BlockSpec(Wt.shape, lambda b: (0, 0, 0)))  # resident
        in_specs.append(pl.BlockSpec(bias.shape, lambda b: (0, 0)))   # resident
        operands += [G.astype(jnp.bfloat16), Wt.astype(jnp.bfloat16),
                     bias.astype(jnp.float32)]

    return pl.pallas_call(
        kernel,
        grid=(B,),
        in_specs=in_specs,
        out_specs=pl.BlockSpec((1, n_final, emb), lambda b: (b, 0, 0)),
        out_shape=jax.ShapeDtypeStruct((B, n_final, emb), jnp.float32),
        compiler_params=pltpu.CompilerParams(
            dimension_semantics=("parallel",)),
    )(*operands)


# --------------------------------------------------------------------------
# Constant (per-model) operand preparation: fold Pool + spiral gather into
# dense per-tap matrices and split the Linear weight per tap.
# TODO(synk): for production-size meshes (thousands of vertices) replace the
# dense gather-pool matrices with a scalar-prefetch DMA row gather and tile the
# node axis in the grid; dense G is only reasonable for small decoder meshes.
# --------------------------------------------------------------------------
def build_decoder_operands(up_dense, spiral_indices, weights, biases):
    num_layer = len(up_dense)
    layer_defs = []
    for i in range(num_layer):
        lvl = num_layer - i - 1
        layer_defs.append((up_dense[lvl], spiral_indices[lvl],
                           weights[i], biases[i], True))
    n_top = spiral_indices[0].shape[0]
    layer_defs.append((jnp.eye(n_top, dtype=jnp.float32), spiral_indices[0],
                       weights[num_layer], biases[num_layer], False))

    Gs, Wts, Bs, n_outs, elus = [], [], [], [], []
    for U, idx, W, b, elu in layer_defs:
        n_out, seq = idx.shape
        emb_out = W.shape[0]
        emb_in = W.shape[1] // seq
        # G[s*n_out + n, :] = U[idx[n, s], :]   (Pool followed by spiral gather)
        G = jnp.take(U, jnp.transpose(idx).reshape(-1), axis=0)
        # Linear weight W[o, s*emb_in + c]  ->  Wt[s, c, o]
        Wt = jnp.transpose(W.reshape(emb_out, seq, emb_in), (1, 2, 0))
        Gs.append(G)
        Wts.append(Wt)
        Bs.append(b.reshape(1, emb_out))
        n_outs.append(n_out)
        elus.append(elu)
    return Gs, Wts, Bs, n_outs, elus


# --------------------------------------------------------------------------
# Pure-JAX reference with PyTorch semantics (fp32, HIGHEST precision)
# --------------------------------------------------------------------------
def _ref_forward(x, up_dense, spiral_indices, weights, biases):
    def pool(h, U):
        return jnp.einsum('oi,bic->boc', U, h, precision=lax.Precision.HIGHEST)

    def spiral_conv(h, idx, W, b):
        bs, _, C = h.shape
        n_nodes, seq = idx.shape
        g = jnp.take(h, idx.reshape(-1), axis=1).reshape(bs, n_nodes, seq * C)
        return jnp.einsum('bnf,of->bno', g, W,
                          precision=lax.Precision.HIGHEST) + b

    num_layer = len(up_dense)
    h = x
    for i in range(num_layer):
        lvl = num_layer - i - 1
        h = jax.nn.elu(spiral_conv(pool(h, up_dense[lvl]), spiral_indices[lvl],
                                   weights[i], biases[i]))
    return spiral_conv(h, spiral_indices[0], weights[num_layer], biases[num_layer])


# --------------------------------------------------------------------------
if __name__ == "__main__":
    B, emb, seq = 2, 64, 9
    n0, n1, n2 = 32, 16, 8            # mesh sizes: fine -> coarse

    key = jax.random.PRNGKey(0)
    ks = iter(jax.random.split(key, 16))

    def make_indices(k, n):
        # spiral neighbourhoods: node itself + (seq-1) neighbours
        return jnp.concatenate(
            [jnp.arange(n, dtype=jnp.int32)[:, None],
             jax.random.randint(k, (n, seq - 1), 0, n, dtype=jnp.int32)], axis=1)

    def make_up(k, n_out, n_in):
        # dense form of a sparse up-transform: 2 parents per row, weights sum to 1
        k1, k2, k3 = jax.random.split(k, 3)
        c1 = jax.random.randint(k1, (n_out,), 0, n_in)
        c2 = jax.random.randint(k2, (n_out,), 0, n_in)
        w = jax.random.uniform(k3, (n_out,), minval=0.3, maxval=0.7)
        U = jnp.zeros((n_out, n_in), jnp.float32)
        U = U.at[jnp.arange(n_out), c1].add(w)
        U = U.at[jnp.arange(n_out), c2].add(1.0 - w)
        return U

    spiral_indices = [make_indices(next(ks), n0), make_indices(next(ks), n1)]
    up_dense = [make_up(next(ks), n0, n1), make_up(next(ks), n1, n2)]

    def xavier(k, fan_in, fan_out):
        bound = (6.0 / (fan_in + fan_out)) ** 0.5
        return jax.random.uniform(k, (fan_out, fan_in), jnp.float32, -bound, bound)

    weights = [xavier(next(ks), seq * emb, emb) for _ in range(3)]
    biases = [0.01 * jax.random.normal(next(ks), (emb,), jnp.float32)
              for _ in range(3)]

    x = jax.random.normal(next(ks), (B, n2, emb), jnp.float32)

    Gs, Wts, Bs, n_outs, elus = build_decoder_operands(
        up_dense, spiral_indices, weights, biases)
    out = jax.block_until_ready(
        spiral_decoder_forward(x, Gs, Wts, Bs, n_outs, elus))

    ref = _ref_forward(x, up_dense, spiral_indices, weights, biases)
    assert out.shape == ref.shape, (out.shape, ref.shape)
    err = float(jnp.max(jnp.abs(out - ref)))
    # Tolerance accounts for bf16 MXU inputs / fp32 accumulation across 3 layers.
    assert jnp.allclose(out, ref, rtol=2e-2, atol=3e-2), err

    print("KERNEL_OK")
</pallas_src>

<mosaic_0001>
module attributes {stable_mosaic.version = 11 : i64} {
  func.func @kernel(%arg0: i32, %arg1: memref<1x8x64xbf16, #tpu.memory_space<vmem>>, %arg2: memref<144x8xbf16, #tpu.memory_space<vmem>>, %arg3: memref<9x64x64xbf16, #tpu.memory_space<vmem>>, %arg4: memref<1x64xf32, #tpu.memory_space<vmem>>, %arg5: memref<288x16xbf16, #tpu.memory_space<vmem>>, %arg6: memref<9x64x64xbf16, #tpu.memory_space<vmem>>, %arg7: memref<1x64xf32, #tpu.memory_space<vmem>>, %arg8: memref<288x32xbf16, #tpu.memory_space<vmem>>, %arg9: memref<9x64x64xbf16, #tpu.memory_space<vmem>>, %arg10: memref<1x64xf32, #tpu.memory_space<vmem>>, %arg11: memref<1x32x64xf32, #tpu.memory_space<vmem>>) attributes {dimension_semantics = [#tpu.dimension_semantics<parallel>], iteration_bounds = array<i64: 2>, scalar_prefetch = 0 : i64, scratch_operands = 0 : i64, tpu.core_type = #tpu.core_type<tc>, window_params = [{transform_indices = @transform_0, window_bounds = array<i64: 1, 8, 64>}, {pipeline_mode = #tpu.pipeline_mode<synchronous>, transform_indices = @transform_1, window_bounds = array<i64: 144, 8>}, {pipeline_mode = #tpu.pipeline_mode<synchronous>, transform_indices = @transform_2, window_bounds = array<i64: 9, 64, 64>}, {pipeline_mode = #tpu.pipeline_mode<synchronous>, transform_indices = @transform_3, window_bounds = array<i64: 1, 64>}, {pipeline_mode = #tpu.pipeline_mode<synchronous>, transform_indices = @transform_4, window_bounds = array<i64: 288, 16>}, {pipeline_mode = #tpu.pipeline_mode<synchronous>, transform_indices = @transform_5, window_bounds = array<i64: 9, 64, 64>}, {pipeline_mode = #tpu.pipeline_mode<synchronous>, transform_indices = @transform_6, window_bounds = array<i64: 1, 64>}, {pipeline_mode = #tpu.pipeline_mode<synchronous>, transform_indices = @transform_7, window_bounds = array<i64: 288, 32>}, {pipeline_mode = #tpu.pipeline_mode<synchronous>, transform_indices = @transform_8, window_bounds = array<i64: 9, 64, 64>}, {pipeline_mode = #tpu.pipeline_mode<synchronous>, transform_indices = @transform_9, window_bounds = array<i64: 1, 64>}, {transform_indices = @transform_10, window_bounds = array<i64: 1, 32, 64>}]} {
    %c0 = arith.constant 0 : index
    %c0_0 = arith.constant 0 : index
    %c0_1 = arith.constant 0 : index
    %0 = vector.load %arg1[%c0, %c0_0, %c0_1] : memref<1x8x64xbf16, #tpu.memory_space<vmem>>, vector<1x8x64xbf16>
    %1 = vector.shape_cast %0 : vector<1x8x64xbf16> to vector<8x64xbf16>
    %c0_2 = arith.constant 0 : index
    %c0_3 = arith.constant 0 : index
    %2 = vector.load %arg2[%c0_2, %c0_3] : memref<144x8xbf16, #tpu.memory_space<vmem>>, vector<144x8xbf16>
    %cst = arith.constant dense<0.000000e+00> : vector<144x64xf32>
    %3 = tpu.matmul %2, %1, %cst {dimension_numbers = #tpu.dot_dimension_numbers<[1], [0], [0], [1], [0, 0, 1, 1], [], []>} : vector<144x8xbf16>, vector<8x64xbf16>, vector<144x64xf32> -> vector<144x64xf32>
    %4 = arith.truncf %3 : vector<144x64xf32> to vector<144x64xbf16>
    %cst_4 = arith.constant 0.000000e+00 : f32
    %5 = vector.broadcast %cst_4 : f32 to vector<16x64xf32>
    %6 = vector.extract_strided_slice %4 {offsets = [0, 0], sizes = [16, 64], strides = [1, 1]} : vector<144x64xbf16> to vector<16x64xbf16>
    %c0_5 = arith.constant 0 : index
    %c0_6 = arith.constant 0 : index
    %c0_7 = arith.constant 0 : index
    %7 = vector.load %arg3[%c0_5, %c0_6, %c0_7] : memref<9x64x64xbf16, #tpu.memory_space<vmem>>, vector<1x64x64xbf16>
    %8 = vector.shape_cast %7 : vector<1x64x64xbf16> to vector<64x64xbf16>
    %cst_8 = arith.constant dense<0.000000e+00> : vector<16x64xf32>
    %9 = tpu.matmul %6, %8, %cst_8 {dimension_numbers = #tpu.dot_dimension_numbers<[1], [0], [0], [1], [0, 0, 1, 1], [], []>} : vector<16x64xbf16>, vector<64x64xbf16>, vector<16x64xf32> -> vector<16x64xf32>
    %10 = arith.addf %5, %9 : vector<16x64xf32>
    %11 = vector.extract_strided_slice %4 {offsets = [16, 0], sizes = [16, 64], strides = [1, 1]} : vector<144x64xbf16> to vector<16x64xbf16>
    %c1 = arith.constant 1 : index
    %c0_9 = arith.constant 0 : index
    %c0_10 = arith.constant 0 : index
    %12 = vector.load %arg3[%c1, %c0_9, %c0_10] : memref<9x64x64xbf16, #tpu.memory_space<vmem>>, vector<1x64x64xbf16>
    %13 = vector.shape_cast %12 : vector<1x64x64xbf16> to vector<64x64xbf16>
    %cst_11 = arith.constant dense<0.000000e+00> : vector<16x64xf32>
    %14 = tpu.matmul %11, %13, %cst_11 {dimension_numbers = #tpu.dot_dimension_numbers<[1], [0], [0], [1], [0, 0, 1, 1], [], []>} : vector<16x64xbf16>, vector<64x64xbf16>, vector<16x64xf32> -> vector<16x64xf32>
    %15 = arith.addf %10, %14 : vector<16x64xf32>
    %16 = vector.extract_strided_slice %4 {offsets = [32, 0], sizes = [16, 64], strides = [1, 1]} : vector<144x64xbf16> to vector<16x64xbf16>
    %c2 = arith.constant 2 : index
    %c0_12 = arith.constant 0 : index
    %c0_13 = arith.constant 0 : index
    %17 = vector.load %arg3[%c2, %c0_12, %c0_13] : memref<9x64x64xbf16, #tpu.memory_space<vmem>>, vector<1x64x64xbf16>
    %18 = vector.shape_cast %17 : vector<1x64x64xbf16> to vector<64x64xbf16>
    %cst_14 = arith.constant dense<0.000000e+00> : vector<16x64xf32>
    %19 = tpu.matmul %16, %18, %cst_14 {dimension_numbers = #tpu.dot_dimension_numbers<[1], [0], [0], [1], [0, 0, 1, 1], [], []>} : vector<16x64xbf16>, vector<64x64xbf16>, vector<16x64xf32> -> vector<16x64xf32>
    %20 = arith.addf %15, %19 : vector<16x64xf32>
    %21 = vector.extract_strided_slice %4 {offsets = [48, 0], sizes = [16, 64], strides = [1, 1]} : vector<144x64xbf16> to vector<16x64xbf16>
    %c3 = arith.constant 3 : index
    %c0_15 = arith.constant 0 : index
    %c0_16 = arith.constant 0 : index
    %22 = vector.load %arg3[%c3, %c0_15, %c0_16] : memref<9x64x64xbf16, #tpu.memory_space<vmem>>, vector<1x64x64xbf16>
    %23 = vector.shape_cast %22 : vector<1x64x64xbf16> to vector<64x64xbf16>
    %cst_17 = arith.constant dense<0.000000e+00> : vector<16x64xf32>
    %24 = tpu.matmul %21, %23, %cst_17 {dimension_numbers = #tpu.dot_dimension_numbers<[1], [0], [0], [1], [0, 0, 1, 1], [], []>} : vector<16x64xbf16>, vector<64x64xbf16>, vector<16x64xf32> -> vector<16x64xf32>
    %25 = arith.addf %20, %24 : vector<16x64xf32>
    %26 = vector.extract_strided_slice %4 {offsets = [64, 0], sizes = [16, 64], strides = [1, 1]} : vector<144x64xbf16> to vector<16x64xbf16>
    %c4 = arith.constant 4 : index
    %c0_18 = arith.constant 0 : index
    %c0_19 = arith.constant 0 : index
    %27 = vector.load %arg3[%c4, %c0_18, %c0_19] : memref<9x64x64xbf16, #tpu.memory_space<vmem>>, vector<1x64x64xbf16>
    %28 = vector.shape_cast %27 : vector<1x64x64xbf16> to vector<64x64xbf16>
    %cst_20 = arith.constant dense<0.000000e+00> : vector<16x64xf32>
    %29 = tpu.matmul %26, %28, %cst_20 {dimension_numbers = #tpu.dot_dimension_numbers<[1], [0], [0], [1], [0, 0, 1, 1], [], []>} : vector<16x64xbf16>, vector<64x64xbf16>, vector<16x64xf32> -> vector<16x64xf32>
    %30 = arith.addf %25, %29 : vector<16x64xf32>
    %31 = vector.extract_strided_slice %4 {offsets = [80, 0], sizes = [16, 64], strides = [1, 1]} : vector<144x64xbf16> to vector<16x64xbf16>
    %c5 = arith.constant 5 : index
    %c0_21 = arith.constant 0 : index
    %c0_22 = arith.constant 0 : index
    %32 = vector.load %arg3[%c5, %c0_21, %c0_22] : memref<9x64x64xbf16, #tpu.memory_space<vmem>>, vector<1x64x64xbf16>
    %33 = vector.shape_cast %32 : vector<1x64x64xbf16> to vector<64x64xbf16>
    %cst_23 = arith.constant dense<0.000000e+00> : vector<16x64xf32>
    %34 = tpu.matmul %31, %33, %cst_23 {dimension_numbers = #tpu.dot_dimension_numbers<[1], [0], [0], [1], [0, 0, 1, 1], [], []>} : vector<16x64xbf16>, vector<64x64xbf16>, vector<16x64xf32> -> vector<16x64xf32>
    %35 = arith.addf %30, %34 : vector<16x64xf32>
    %36 = vector.extract_strided_slice %4 {offsets = [96, 0], sizes = [16, 64], strides = [1, 1]} : vector<144x64xbf16> to vector<16x64xbf16>
    %c6 = arith.constant 6 : index
    %c0_24 = arith.constant 0 : index
    %c0_25 = arith.constant 0 : index
    %37 = vector.load %arg3[%c6, %c0_24, %c0_25] : memref<9x64x64xbf16, #tpu.memory_space<vmem>>, vector<1x64x64xbf16>
    %38 = vector.shape_cast %37 : vector<1x64x64xbf16> to vector<64x64xbf16>
    %cst_26 = arith.constant dense<0.000000e+00> : vector<16x64xf32>
    %39 = tpu.matmul %36, %38, %cst_26 {dimension_numbers = #tpu.dot_dimension_numbers<[1], [0], [0], [1], [0, 0, 1, 1], [], []>} : vector<16x64xbf16>, vector<64x64xbf16>, vector<16x64xf32> -> vector<16x64xf32>
    %40 = arith.addf %35, %39 : vector<16x64xf32>
    %41 = vector.extract_strided_slice %4 {offsets = [112, 0], sizes = [16, 64], strides = [1, 1]} : vector<144x64xbf16> to vector<16x64xbf16>
    %c7 = arith.constant 7 : index
    %c0_27 = arith.constant 0 : index
    %c0_28 = arith.constant 0 : index
    %42 = vector.load %arg3[%c7, %c0_27, %c0_28] : memref<9x64x64xbf16, #tpu.memory_space<vmem>>, vector<1x64x64xbf16>
    %43 = vector.shape_cast %42 : vector<1x64x64xbf16> to vector<64x64xbf16>
    %cst_29 = arith.constant dense<0.000000e+00> : vector<16x64xf32>
    %44 = tpu.matmul %41, %43, %cst_29 {dimension_numbers = #tpu.dot_dimension_numbers<[1], [0], [0], [1], [0, 0, 1, 1], [], []>} : vector<16x64xbf16>, vector<64x64xbf16>, vector<16x64xf32> -> vector<16x64xf32>
    %45 = arith.addf %40, %44 : vector<16x64xf32>
    %46 = vector.extract_strided_slice %4 {offsets = [128, 0], sizes = [16, 64], strides = [1, 1]} : vector<144x64xbf16> to vector<16x64xbf16>
    %c8 = arith.constant 8 : index
    %c0_30 = arith.constant 0 : index
    %c0_31 = arith.constant 0 : index
    %47 = vector.load %arg3[%c8, %c0_30, %c0_31] : memref<9x64x64xbf16, #tpu.memory_space<vmem>>, vector<1x64x64xbf16>
    %48 = vector.shape_cast %47 : vector<1x64x64xbf16> to vector<64x64xbf16>
    %cst_32 = arith.constant dense<0.000000e+00> : vector<16x64xf32>
    %49 = tpu.matmul %46, %48, %cst_32 {dimension_numbers = #tpu.dot_dimension_numbers<[1], [0], [0], [1], [0, 0, 1, 1], [], []>} : vector<16x64xbf16>, vector<64x64xbf16>, vector<16x64xf32> -> vector<16x64xf32>
    %50 = arith.addf %45, %49 : vector<16x64xf32>
    %c0_33 = arith.constant 0 : index
    %c0_34 = arith.constant 0 : index
    %51 = vector.load %arg4[%c0_33, %c0_34] : memref<1x64xf32, #tpu.memory_space<vmem>>, vector<1x64xf32>
    %52 = vector.broadcast %51 : vector<1x64xf32> to vector<16x64xf32>
    %53 = arith.addf %50, %52 : vector<16x64xf32>
    %cst_35 = arith.constant 0.000000e+00 : f32
    %54 = vector.broadcast %cst_35 : f32 to vector<16x64xf32>
    %55 = arith.cmpf ogt, %53, %54 : vector<16x64xf32>
    %cst_36 = arith.constant 0.000000e+00 : f32
    %56 = vector.broadcast %cst_36 : f32 to vector<16x64xf32>
    %57 = arith.minimumf %53, %56 : vector<16x64xf32>
    %58 = math.exp %57 : vector<16x64xf32>
    %cst_37 = arith.constant 1.000000e+00 : f32
    %59 = vector.broadcast %cst_37 : f32 to vector<16x64xf32>
    %60 = arith.subf %58, %59 : vector<16x64xf32>
    %61 = arith.select %55, %53, %60 : vector<16x64xi1>, vector<16x64xf32>
    %62 = arith.truncf %61 : vector<16x64xf32> to vector<16x64xbf16>
    %c0_38 = arith.constant 0 : index
    %c0_39 = arith.constant 0 : index
    %63 = vector.load %arg5[%c0_38, %c0_39] : memref<288x16xbf16, #tpu.memory_space<vmem>>, vector<288x16xbf16>
    %cst_40 = arith.constant dense<0.000000e+00> : vector<288x64xf32>
    %64 = tpu.matmul %63, %62, %cst_40 {dimension_numbers = #tpu.dot_dimension_numbers<[1], [0], [0], [1], [0, 0, 1, 1], [], []>} : vector<288x16xbf16>, vector<16x64xbf16>, vector<288x64xf32> -> vector<288x64xf32>
    %65 = arith.truncf %64 : vector<288x64xf32> to vector<288x64xbf16>
    %cst_41 = arith.constant 0.000000e+00 : f32
    %66 = vector.broadcast %cst_41 : f32 to vector<32x64xf32>
    %67 = vector.extract_strided_slice %65 {offsets = [0, 0], sizes = [32, 64], strides = [1, 1]} : vector<288x64xbf16> to vector<32x64xbf16>
    %c0_42 = arith.constant 0 : index
    %c0_43 = arith.constant 0 : index
    %c0_44 = arith.constant 0 : index
    %68 = vector.load %arg6[%c0_42, %c0_43, %c0_44] : memref<9x64x64xbf16, #tpu.memory_space<vmem>>, vector<1x64x64xbf16>
    %69 = vector.shape_cast %68 : vector<1x64x64xbf16> to vector<64x64xbf16>
    %cst_45 = arith.constant dense<0.000000e+00> : vector<32x64xf32>
    %70 = tpu.matmul %67, %69, %cst_45 {dimension_numbers = #tpu.dot_dimension_numbers<[1], [0], [0], [1], [0, 0, 1, 1], [], []>} : vector<32x64xbf16>, vector<64x64xbf16>, vector<32x64xf32> -> vector<32x64xf32>
    %71 = arith.addf %66, %70 : vector<32x64xf32>
    %72 = vector.extract_strided_slice %65 {offsets = [32, 0], sizes = [32, 64], strides = [1, 1]} : vector<288x64xbf16> to vector<32x64xbf16>
    %c1_46 = arith.constant 1 : index
    %c0_47 = arith.constant 0 : index
    %c0_48 = arith.constant 0 : index
    %73 = vector.load %arg6[%c1_46, %c0_47, %c0_48] : memref<9x64x64xbf16, #tpu.memory_space<vmem>>, vector<1x64x64xbf16>
    %74 = vector.shape_cast %73 : vector<1x64x64xbf16> to vector<64x64xbf16>
    %cst_49 = arith.constant dense<0.000000e+00> : vector<32x64xf32>
    %75 = tpu.matmul %72, %74, %cst_49 {dimension_numbers = #tpu.dot_dimension_numbers<[1], [0], [0], [1], [0, 0, 1, 1], [], []>} : vector<32x64xbf16>, vector<64x64xbf16>, vector<32x64xf32> -> vector<32x64xf32>
    %76 = arith.addf %71, %75 : vector<32x64xf32>
    %77 = vector.extract_strided_slice %65 {offsets = [64, 0], sizes = [32, 64], strides = [1, 1]} : vector<288x64xbf16> to vector<32x64xbf16>
    %c2_50 = arith.constant 2 : index
    %c0_51 = arith.constant 0 : index
    %c0_52 = arith.constant 0 : index
    %78 = vector.load %arg6[%c2_50, %c0_51, %c0_52] : memref<9x64x64xbf16, #tpu.memory_space<vmem>>, vector<1x64x64xbf16>
    %79 = vector.shape_cast %78 : vector<1x64x64xbf16> to vector<64x64xbf16>
    %cst_53 = arith.constant dense<0.000000e+00> : vector<32x64xf32>
    %80 = tpu.matmul %77, %79, %cst_53 {dimension_numbers = #tpu.dot_dimension_numbers<[1], [0], [0], [1], [0, 0, 1, 1], [], []>} : vector<32x64xbf16>, vector<64x64xbf16>, vector<32x64xf32> -> vector<32x64xf32>
    %81 = arith.addf %76, %80 : vector<32x64xf32>
    %82 = vector.extract_strided_slice %65 {offsets = [96, 0], sizes = [32, 64], strides = [1, 1]} : vector<288x64xbf16> to vector<32x64xbf16>
    %c3_54 = arith.constant 3 : index
    %c0_55 = arith.constant 0 : index
    %c0_56 = arith.constant 0 : index
    %83 = vector.load %arg6[%c3_54, %c0_55, %c0_56] : memref<9x64x64xbf16, #tpu.memory_space<vmem>>, vector<1x64x64xbf16>
    %84 = vector.shape_cast %83 : vector<1x64x64xbf16> to vector<64x64xbf16>
    %cst_57 = arith.constant dense<0.000000e+00> : vector<32x64xf32>
    %85 = tpu.matmul %82, %84, %cst_57 {dimension_numbers = #tpu.dot_dimension_numbers<[1], [0], [0], [1], [0, 0, 1, 1], [], []>} : vector<32x64xbf16>, vector<64x64xbf16>, vector<32x64xf32> -> vector<32x64xf32>
    %86 = arith.addf %81, %85 : vector<32x64xf32>
    %87 = vector.extract_strided_slice %65 {offsets = [128, 0], sizes = [32, 64], strides = [1, 1]} : vector<288x64xbf16> to vector<32x64xbf16>
    %c4_58 = arith.constant 4 : index
    %c0_59 = arith.constant 0 : index
    %c0_60 = arith.constant 0 : index
    %88 = vector.load %arg6[%c4_58, %c0_59, %c0_60] : memref<9x64x64xbf16, #tpu.memory_space<vmem>>, vector<1x64x64xbf16>
    %89 = vector.shape_cast %88 : vector<1x64x64xbf16> to vector<64x64xbf16>
    %cst_61 = arith.constant dense<0.000000e+00> : vector<32x64xf32>
    %90 = tpu.matmul %87, %89, %cst_61 {dimension_numbers = #tpu.dot_dimension_numbers<[1], [0], [0], [1], [0, 0, 1, 1], [], []>} : vector<32x64xbf16>, vector<64x64xbf16>, vector<32x64xf32> -> vector<32x64xf32>
    %91 = arith.addf %86, %90 : vector<32x64xf32>
    %92 = vector.extract_strided_slice %65 {offsets = [160, 0], sizes = [32, 64], strides = [1, 1]} : vector<288x64xbf16> to vector<32x64xbf16>
    %c5_62 = arith.constant 5 : index
    %c0_63 = arith.constant 0 : index
    %c0_64 = arith.constant 0 : index
    %93 = vector.load %arg6[%c5_62, %c0_63, %c0_64] : memref<9x64x64xbf16, #tpu.memory_space<vmem>>, vector<1x64x64xbf16>
    %94 = vector.shape_cast %93 : vector<1x64x64xbf16> to vector<64x64xbf16>
    %cst_65 = arith.constant dense<0.000000e+00> : vector<32x64xf32>
    %95 = tpu.matmul %92, %94, %cst_65 {dimension_numbers = #tpu.dot_dimension_numbers<[1], [0], [0], [1], [0, 0, 1, 1], [], []>} : vector<32x64xbf16>, vector<64x64xbf16>, vector<32x64xf32> -> vector<32x64xf32>
    %96 = arith.addf %91, %95 : vector<32x64xf32>
    %97 = vector.extract_strided_slice %65 {offsets = [192, 0], sizes = [32, 64], strides = [1, 1]} : vector<288x64xbf16> to vector<32x64xbf16>
    %c6_66 = arith.constant 6 : index
    %c0_67 = arith.constant 0 : index
    %c0_68 = arith.constant 0 : index
    %98 = vector.load %arg6[%c6_66, %c0_67, %c0_68] : memref<9x64x64xbf16, #tpu.memory_space<vmem>>, vector<1x64x64xbf16>
    %99 = vector.shape_cast %98 : vector<1x64x64xbf16> to vector<64x64xbf16>
    %cst_69 = arith.constant dense<0.000000e+00> : vector<32x64xf32>
    %100 = tpu.matmul %97, %99, %cst_69 {dimension_numbers = #tpu.dot_dimension_numbers<[1], [0], [0], [1], [0, 0, 1, 1], [], []>} : vector<32x64xbf16>, vector<64x64xbf16>, vector<32x64xf32> -> vector<32x64xf32>
    %101 = arith.addf %96, %100 : vector<32x64xf32>
    %102 = vector.extract_strided_slice %65 {offsets = [224, 0], sizes = [32, 64], strides = [1, 1]} : vector<288x64xbf16> to vector<32x64xbf16>
    %c7_70 = arith.constant 7 : index
    %c0_71 = arith.constant 0 : index
    %c0_72 = arith.constant 0 : index
    %103 = vector.load %arg6[%c7_70, %c0_71, %c0_72] : memref<9x64x64xbf16, #tpu.memory_space<vmem>>, vector<1x64x64xbf16>
    %104 = vector.shape_cast %103 : vector<1x64x64xbf16> to vector<64x64xbf16>
    %cst_73 = arith.constant dense<0.000000e+00> : vector<32x64xf32>
    %105 = tpu.matmul %102, %104, %cst_73 {dimension_numbers = #tpu.dot_dimension_numbers<[1], [0], [0], [1], [0, 0, 1, 1], [], []>} : vector<32x64xbf16>, vector<64x64xbf16>, vector<32x64xf32> -> vector<32x64xf32>
    %106 = arith.addf %101, %105 : vector<32x64xf32>
    %107 = vector.extract_strided_slice %65 {offsets = [256, 0], sizes = [32, 64], strides = [1, 1]} : vector<288x64xbf16> to vector<32x64xbf16>
    %c8_74 = arith.constant 8 : index
    %c0_75 = arith.constant 0 : index
    %c0_76 = arith.constant 0 : index
    %108 = vector.load %arg6[%c8_74, %c0_75, %c0_76] : memref<9x64x64xbf16, #tpu.memory_space<vmem>>, vector<1x64x64xbf16>
    %109 = vector.shape_cast %108 : vector<1x64x64xbf16> to vector<64x64xbf16>
    %cst_77 = arith.constant dense<0.000000e+00> : vector<32x64xf32>
    %110 = tpu.matmul %107, %109, %cst_77 {dimension_numbers = #tpu.dot_dimension_numbers<[1], [0], [0], [1], [0, 0, 1, 1], [], []>} : vector<32x64xbf16>, vector<64x64xbf16>, vector<32x64xf32> -> vector<32x64xf32>
    %111 = arith.addf %106, %110 : vector<32x64xf32>
    %c0_78 = arith.constant 0 : index
    %c0_79 = arith.constant 0 : index
    %112 = vector.load %arg7[%c0_78, %c0_79] : memref<1x64xf32, #tpu.memory_space<vmem>>, vector<1x64xf32>
    %113 = vector.broadcast %112 : vector<1x64xf32> to vector<32x64xf32>
    %114 = arith.addf %111, %113 : vector<32x64xf32>
    %cst_80 = arith.constant 0.000000e+00 : f32
    %115 = vector.broadcast %cst_80 : f32 to vector<32x64xf32>
    %116 = arith.cmpf ogt, %114, %115 : vector<32x64xf32>
    %cst_81 = arith.constant 0.000000e+00 : f32
    %117 = vector.broadcast %cst_81 : f32 to vector<32x64xf32>
    %118 = arith.minimumf %114, %117 : vector<32x64xf32>
    %119 = math.exp %118 : vector<32x64xf32>
    %cst_82 = arith.constant 1.000000e+00 : f32
    %120 = vector.broadcast %cst_82 : f32 to vector<32x64xf32>
    %121 = arith.subf %119, %120 : vector<32x64xf32>
    %122 = arith.select %116, %114, %121 : vector<32x64xi1>, vector<32x64xf32>
    %123 = arith.truncf %122 : vector<32x64xf32> to vector<32x64xbf16>
    %c0_83 = arith.constant 0 : index
    %c0_84 = arith.constant 0 : index
    %124 = vector.load %arg8[%c0_83, %c0_84] : memref<288x32xbf16, #tpu.memory_space<vmem>>, vector<288x32xbf16>
    %cst_85 = arith.constant dense<0.000000e+00> : vector<288x64xf32>
    %125 = tpu.matmul %124, %123, %cst_85 {dimension_numbers = #tpu.dot_dimension_numbers<[1], [0], [0], [1], [0, 0, 1, 1], [], []>} : vector<288x32xbf16>, vector<32x64xbf16>, vector<288x64xf32> -> vector<288x64xf32>
    %126 = arith.truncf %125 : vector<288x64xf32> to vector<288x64xbf16>
    %cst_86 = arith.constant 0.000000e+00 : f32
    %127 = vector.broadcast %cst_86 : f32 to vector<32x64xf32>
    %128 = vector.extract_strided_slice %126 {offsets = [0, 0], sizes = [32, 64], strides = [1, 1]} : vector<288x64xbf16> to vector<32x64xbf16>
    %c0_87 = arith.constant 0 : index
    %c0_88 = arith.constant 0 : index
    %c0_89 = arith.constant 0 : index
    %129 = vector.load %arg9[%c0_87, %c0_88, %c0_89] : memref<9x64x64xbf16, #tpu.memory_space<vmem>>, vector<1x64x64xbf16>
    %130 = vector.shape_cast %129 : vector<1x64x64xbf16> to vector<64x64xbf16>
    %cst_90 = arith.constant dense<0.000000e+00> : vector<32x64xf32>
    %131 = tpu.matmul %128, %130, %cst_90 {dimension_numbers = #tpu.dot_dimension_numbers<[1], [0], [0], [1], [0, 0, 1, 1], [], []>} : vector<32x64xbf16>, vector<64x64xbf16>, vector<32x64xf32> -> vector<32x64xf32>
    %132 = arith.addf %127, %131 : vector<32x64xf32>
    %133 = vector.extract_strided_slice %126 {offsets = [32, 0], sizes = [32, 64], strides = [1, 1]} : vector<288x64xbf16> to vector<32x64xbf16>
    %c1_91 = arith.constant 1 : index
    %c0_92 = arith.constant 0 : index
    %c0_93 = arith.constant 0 : index
    %134 = vector.load %arg9[%c1_91, %c0_92, %c0_93] : memref<9x64x64xbf16, #tpu.memory_space<vmem>>, vector<1x64x64xbf16>
    %135 = vector.shape_cast %134 : vector<1x64x64xbf16> to vector<64x64xbf16>
    %cst_94 = arith.constant dense<0.000000e+00> : vector<32x64xf32>
    %136 = tpu.matmul %133, %135, %cst_94 {dimension_numbers = #tpu.dot_dimension_numbers<[1], [0], [0], [1], [0, 0, 1, 1], [], []>} : vector<32x64xbf16>, vector<64x64xbf16>, vector<32x64xf32> -> vector<32x64xf32>
    %137 = arith.addf %132, %136 : vector<32x64xf32>
    %138 = vector.extract_strided_slice %126 {offsets = [64, 0], sizes = [32, 64], strides = [1, 1]} : vector<288x64xbf16> to vector<32x64xbf16>
    %c2_95 = arith.constant 2 : index
    %c0_96 = arith.constant 0 : index
    %c0_97 = arith.constant 0 : index
    %139 = vector.load %arg9[%c2_95, %c0_96, %c0_97] : memref<9x64x64xbf16, #tpu.memory_space<vmem>>, vector<1x64x64xbf16>
    %140 = vector.shape_cast %139 : vector<1x64x64xbf16> to vector<64x64xbf16>
    %cst_98 = arith.constant dense<0.000000e+00> : vector<32x64xf32>
    %141 = tpu.matmul %138, %140, %cst_98 {dimension_numbers = #tpu.dot_dimension_numbers<[1], [0], [0], [1], [0, 0, 1, 1], [], []>} : vector<32x64xbf16>, vector<64x64xbf16>, vector<32x64xf32> -> vector<32x64xf32>
    %142 = arith.addf %137, %141 : vector<32x64xf32>
    %143 = vector.extract_strided_slice %126 {offsets = [96, 0], sizes = [32, 64], strides = [1, 1]} : vector<288x64xbf16> to vector<32x64xbf16>
    %c3_99 = arith.constant 3 : index
    %c0_100 = arith.constant 0 : index
    %c0_101 = arith.constant 0 : index
    %144 = vector.load %arg9[%c3_99, %c0_100, %c0_101] : memref<9x64x64xbf16, #tpu.memory_space<vmem>>, vector<1x64x64xbf16>
    %145 = vector.shape_cast %144 : vector<1x64x64xbf16> to vector<64x64xbf16>
    %cst_102 = arith.constant dense<0.000000e+00> : vector<32x64xf32>
    %146 = tpu.matmul %143, %145, %cst_102 {dimension_numbers = #tpu.dot_dimension_numbers<[1], [0], [0], [1], [0, 0, 1, 1], [], []>} : vector<32x64xbf16>, vector<64x64xbf16>, vector<32x64xf32> -> vector<32x64xf32>
    %147 = arith.addf %142, %146 : vector<32x64xf32>
    %148 = vector.extract_strided_slice %126 {offsets = [128, 0], sizes = [32, 64], strides = [1, 1]} : vector<288x64xbf16> to vector<32x64xbf16>
    %c4_103 = arith.constant 4 : index
    %c0_104 = arith.constant 0 : index
    %c0_105 = arith.constant 0 : index
    %149 = vector.load %arg9[%c4_103, %c0_104, %c0_105] : memref<9x64x64xbf16, #tpu.memory_space<vmem>>, vector<1x64x64xbf16>
    %150 = vector.shape_cast %149 : vector<1x64x64xbf16> to vector<64x64xbf16>
    %cst_106 = arith.constant dense<0.000000e+00> : vector<32x64xf32>
    %151 = tpu.matmul %148, %150, %cst_106 {dimension_numbers = #tpu.dot_dimension_numbers<[1], [0], [0], [1], [0, 0, 1, 1], [], []>} : vector<32x64xbf16>, vector<64x64xbf16>, vector<32x64xf32> -> vector<32x64xf32>
    %152 = arith.addf %147, %151 : vector<32x64xf32>
    %153 = vector.extract_strided_slice %126 {offsets = [160, 0], sizes = [32, 64], strides = [1, 1]} : vector<288x64xbf16> to vector<32x64xbf16>
    %c5_107 = arith.constant 5 : index
    %c0_108 = arith.constant 0 : index
    %c0_109 = arith.constant 0 : index
    %154 = vector.load %arg9[%c5_107, %c0_108, %c0_109] : memref<9x64x64xbf16, #tpu.memory_space<vmem>>, vector<1x64x64xbf16>
    %155 = vector.shape_cast %154 : vector<1x64x64xbf16> to vector<64x64xbf16>
    %cst_110 = arith.constant dense<0.000000e+00> : vector<32x64xf32>
    %156 = tpu.matmul %153, %155, %cst_110 {dimension_numbers = #tpu.dot_dimension_numbers<[1], [0], [0], [1], [0, 0, 1, 1], [], []>} : vector<32x64xbf16>, vector<64x64xbf16>, vector<32x64xf32> -> vector<32x64xf32>
    %157 = arith.addf %152, %156 : vector<32x64xf32>
    %158 = vector.extract_strided_slice %126 {offsets = [192, 0], sizes = [32, 64], strides = [1, 1]} : vector<288x64xbf16> to vector<32x64xbf16>
    %c6_111 = arith.constant 6 : index
    %c0_112 = arith.constant 0 : index
    %c0_113 = arith.constant 0 : index
    %159 = vector.load %arg9[%c6_111, %c0_112, %c0_113] : memref<9x64x64xbf16, #tpu.memory_space<vmem>>, vector<1x64x64xbf16>
    %160 = vector.shape_cast %159 : vector<1x64x64xbf16> to vector<64x64xbf16>
    %cst_114 = arith.constant dense<0.000000e+00> : vector<32x64xf32>
    %161 = tpu.matmul %158, %160, %cst_114 {dimension_numbers = #tpu.dot_dimension_numbers<[1], [0], [0], [1], [0, 0, 1, 1], [], []>} : vector<32x64xbf16>, vector<64x64xbf16>, vector<32x64xf32> -> vector<32x64xf32>
    %162 = arith.addf %157, %161 : vector<32x64xf32>
    %163 = vector.extract_strided_slice %126 {offsets = [224, 0], sizes = [32, 64], strides = [1, 1]} : vector<288x64xbf16> to vector<32x64xbf16>
    %c7_115 = arith.constant 7 : index
    %c0_116 = arith.constant 0 : index
    %c0_117 = arith.constant 0 : index
    %164 = vector.load %arg9[%c7_115, %c0_116, %c0_117] : memref<9x64x64xbf16, #tpu.memory_space<vmem>>, vector<1x64x64xbf16>
    %165 = vector.shape_cast %164 : vector<1x64x64xbf16> to vector<64x64xbf16>
    %cst_118 = arith.constant dense<0.000000e+00> : vector<32x64xf32>
    %166 = tpu.matmul %163, %165, %cst_118 {dimension_numbers = #tpu.dot_dimension_numbers<[1], [0], [0], [1], [0, 0, 1, 1], [], []>} : vector<32x64xbf16>, vector<64x64xbf16>, vector<32x64xf32> -> vector<32x64xf32>
    %167 = arith.addf %162, %166 : vector<32x64xf32>
    %168 = vector.extract_strided_slice %126 {offsets = [256, 0], sizes = [32, 64], strides = [1, 1]} : vector<288x64xbf16> to vector<32x64xbf16>
    %c8_119 = arith.constant 8 : index
    %c0_120 = arith.constant 0 : index
    %c0_121 = arith.constant 0 : index
    %169 = vector.load %arg9[%c8_119, %c0_120, %c0_121] : memref<9x64x64xbf16, #tpu.memory_space<vmem>>, vector<1x64x64xbf16>
    %170 = vector.shape_cast %169 : vector<1x64x64xbf16> to vector<64x64xbf16>
    %cst_122 = arith.constant dense<0.000000e+00> : vector<32x64xf32>
    %171 = tpu.matmul %168, %170, %cst_122 {dimension_numbers = #tpu.dot_dimension_numbers<[1], [0], [0], [1], [0, 0, 1, 1], [], []>} : vector<32x64xbf16>, vector<64x64xbf16>, vector<32x64xf32> -> vector<32x64xf32>
    %172 = arith.addf %167, %171 : vector<32x64xf32>
    %c0_123 = arith.constant 0 : index
    %c0_124 = arith.constant 0 : index
    %173 = vector.load %arg10[%c0_123, %c0_124] : memref<1x64xf32, #tpu.memory_space<vmem>>, vector<1x64xf32>
    %174 = vector.broadcast %173 : vector<1x64xf32> to vector<32x64xf32>
    %175 = arith.addf %172, %174 : vector<32x64xf32>
    %c0_125 = arith.constant 0 : index
    %c0_126 = arith.constant 0 : index
    %c0_127 = arith.constant 0 : index
    %176 = vector.load %arg11[%c0_125, %c0_126, %c0_127] : memref<1x32x64xf32, #tpu.memory_space<vmem>>, vector<1x32x64xf32>
    %177 = vector.shape_cast %176 : vector<1x32x64xf32> to vector<32x64xf32>
    %178 = vector.shape_cast %175 : vector<32x64xf32> to vector<1x32x64xf32>
    tpu.vector_store %arg11[%c0_125, %c0_126, %c0_127], %178 {strides = array<i32>} : memref<1x32x64xf32, #tpu.memory_space<vmem>>, vector<1x32x64xf32>,
    return
  }
  func.func @transform_0(%arg0: i32) -> (i32, i32, i32) {
    %c0_i32 = arith.constant 0 : i32
    %c0_i32_0 = arith.constant 0 : i32
    %c0_i32_1 = arith.constant 0 : i32
    return %arg0, %c0_i32, %c0_i32_0 : i32, i32, i32
  }
  func.func @transform_1(%arg0: i32) -> (i32, i32) {
    %c0_i32 = arith.constant 0 : i32
    %c0_i32_0 = arith.constant 0 : i32
    %c0_i32_1 = arith.constant 0 : i32
    return %c0_i32, %c0_i32_0 : i32, i32
  }
  func.func @transform_2(%arg0: i32) -> (i32, i32, i32) {
    %c0_i32 = arith.constant 0 : i32
    %c0_i32_0 = arith.constant 0 : i32
    %c0_i32_1 = arith.constant 0 : i32
    %c0_i32_2 = arith.constant 0 : i32
    return %c0_i32, %c0_i32_0, %c0_i32_1 : i32, i32, i32
  }
  func.func @transform_3(%arg0: i32) -> (i32, i32) {
    %c0_i32 = arith.constant 0 : i32
    %c0_i32_0 = arith.constant 0 : i32
    %c0_i32_1 = arith.constant 0 : i32
    return %c0_i32, %c0_i32_0 : i32, i32
  }
  func.func @transform_4(%arg0: i32) -> (i32, i32) {
    %c0_i32 = arith.constant 0 : i32
    %c0_i32_0 = arith.constant 0 : i32
    %c0_i32_1 = arith.constant 0 : i32
    return %c0_i32, %c0_i32_0 : i32, i32
  }
  func.func @transform_5(%arg0: i32) -> (i32, i32, i32) {
    %c0_i32 = arith.constant 0 : i32
    %c0_i32_0 = arith.constant 0 : i32
    %c0_i32_1 = arith.constant 0 : i32
    %c0_i32_2 = arith.constant 0 : i32
    return %c0_i32, %c0_i32_0, %c0_i32_1 : i32, i32, i32
  }
  func.func @transform_6(%arg0: i32) -> (i32, i32) {
    %c0_i32 = arith.constant 0 : i32
    %c0_i32_0 = arith.constant 0 : i32
    %c0_i32_1 = arith.constant 0 : i32
    return %c0_i32, %c0_i32_0 : i32, i32
  }
  func.func @transform_7(%arg0: i32) -> (i32, i32) {
    %c0_i32 = arith.constant 0 : i32
    %c0_i32_0 = arith.constant 0 : i32
    %c0_i32_1 = arith.constant 0 : i32
    return %c0_i32, %c0_i32_0 : i32, i32
  }
  func.func @transform_8(%arg0: i32) -> (i32, i32, i32) {
    %c0_i32 = arith.constant 0 : i32
    %c0_i32_0 = arith.constant 0 : i32
    %c0_i32_1 = arith.constant 0 : i32
    %c0_i32_2 = arith.constant 0 : i32
    return %c0_i32, %c0_i32_0, %c0_i32_1 : i32, i32, i32
  }
  func.func @transform_9(%arg0: i32) -> (i32, i32) {
    %c0_i32 = arith.constant 0 : i32
    %c0_i32_0 = arith.constant 0 : i32
    %c0_i32_1 = arith.constant 0 : i32
    return %c0_i32, %c0_i32_0 : i32, i32
  }
  func.func @transform_10(%arg0: i32) -> (i32, i32, i32) {
    %c0_i32 = arith.constant 0 : i32
    %c0_i32_0 = arith.constant 0 : i32
    %c0_i32_1 = arith.constant 0 : i32
    return %arg0, %c0_i32, %c0_i32_0 : i32, i32, i32
  }
}

</mosaic_0001>

<bundles_post_ra>
// kernel: tpu_custom_call.1
= control target key start
LH: loop header
LB: loop body
LE: loop exit
PB: predicated region body
PF: predicated region fallthrough
CT: control target
= control target key end

     0   :  { %15 = vsyncpa [#allocation3], 0  ;;  %s6024_s0 = inlined_call_operand.vmem [shape: bf16[2,8,64], index: 0, kind: input, shape index: {}]   ;;  %s6025_s1 = inlined_call_operand.vmem [shape: bf16[144,8], index: 1, kind: input, shape index: {}]   ;;  %s6026_s2 = inlined_call_operand.vmem [shape: bf16[9,64,64], index: 2, kind: input, shape index: {}]   ;;  %s6027_s3 = inlined_call_operand.vmem [shape: f32[1,64], index: 3, kind: input, shape index: {}]   ;;  %s6028_s4 = inlined_call_operand.vmem [shape: bf16[288,16], index: 4, kind: input, shape index: {}]   ;;  %s6029_s5 = inlined_call_operand.hbm [shape: bf16[9,64,64], index: 5, kind: input, shape index: {}]   ;;  %s6030_s6 = inlined_call_operand.vmem [shape: f32[1,64], index: 6, kind: input, shape index: {}]   ;;  %s6031_s7 = inlined_call_operand.vmem [shape: bf16[288,32], index: 7, kind: input, shape index: {}]   ;;  %s6032_s8 = inlined_call_operand.hbm [shape: bf16[9,64,64], index: 8, kind: input, shape index: {}]   ;;  %s6033_s9 = inlined_call_operand.vmem [shape: f32[1,64], index: 9, kind: input, shape index: {}]   ;;  %s6034_s10 = inlined_call_operand.hbm [shape: f32[2,32,64], index: 10, kind: output, shape index: {}]  }
   0x1   :  { %16 = vsyncpa [#allocation6], 0 }
   0x2   :  { %17 = vsyncpa [#allocation4], 0 }
   0x3   :  { %19 = vsyncpa [#allocation4 + $0x1], 0  ;;  %s5328_s13 = smov 0   ;;  %s5330_s14 = smov 0  }
   0x4   :  { %s5332_s15 = smov 0   ;;  %s5334_s16 = smov 0  }
   0x5 LB: > { %6042 = sst [smem:[#allocation11_spill]] %s5258_s15  ;;  %s5349_s17 = sadd.s32 4294967295, %s5262_s16   ;;  %s5262_s16 = sphi %s5334_s16, %s6058_s16   ;;  %s5258_s15 = sphi %s5332_s15, %s6060_s15   ;;  %s5254_s14 = sphi %s5330_s14, %s6062_s14   ;;  %s5250_s13 = sphi %s5328_s13, %s6061_s13  }
   0x6   : > { %s3865_s18 = sadd.s32 4294967294, %s5262_s16   ;;  %s5353_s19 = sadd.s32 1, %s5262_s16  }
   0x7   : > { %6043 = sst [smem:[#allocation12_spill]] %s5353_s19  ;;  %s247_s20 = sadd.s32 1, %s5258_s15 }
   0x8   : > { %s244_s21 = ssub.s32 %s5262_s16, %s5353_s19  ;;  %p257_p0 = scmp.ne.s32.totalorder %s5258_s15, %s5254_s14 }
   0x9   : > { %p245_p1 = scmp.eq.s32.totalorder %s244_s21, 0  ;;  %p258_p2 = scmp.eq.s32.totalorder %s5349_s17, 1 }
   0xa   : > { %p263_p3 = scmp.ne.s32.totalorder %s5254_s14, %s5250_s13  ;;  %p264_p4 = scmp.eq.s32.totalorder %s3865_s18, 1 }
   0xb   : > { %s5364_s22 = scalar_select %p245_p1, %s5258_s15, %s247_s20  }
   0xc   : > { %p5366_p5 = por %p258_p2, %p257_p0  ;;  %p5370_p6 = por %p264_p4, %p263_p3 }
   0xd   : > { %6044 = sst [smem:[#allocation13_spill]] %s5364_s22  ;;  %p3866_p7 = scmp.ge.s32.totalorder %s5262_s16, 1 }
   0xe   : > { %s6045_s23 = scalar_select %p5366_p5, 1, 0 }
   0xf   : > { %s6046_s24 = scalar_select %p5370_p6, 1, 0 }
  0x10   : > { %p271_p8 = scmp.lt.s32.totalorder %s5262_s16, 3  ;;  %p6035_p9 = scmp.eq.s32.totalorder %s5349_s17, 0 }
  0x11   : > { %6047 = sst [smem:[#allocation14_spill]] %s6046_s24  ;;  %s5264_s26 = smov [#allocation2]  }
  0x12   : > { %p5377_p10 = pnand %p3866_p7, %p271_p8  ;;  %s295_s27 = sshll.u32 %s5264_s26, 4  ;;  %s296_s27 = int_to_ptr.vmem [resolvable:$true] %s295_s27 }
  0x13   : > { %s5265_s29 = smov [#allocation5]   ;;  %s5136_s18 = scalar_lea.hbm %s6029_s5, 4608 }
  0x14   : > { %s6048_s25 = scalar_select %p5377_p10, 1, 0 }
  0x15   : > { %p4915_p11 = pneg %p5377_p10  ;;  %s314_s30 = sshll.u32 %s5265_s29, 4  ;;  %s5389_s30 = int_to_ptr.vmem [resolvable:$true] %s314_s30 }
  0x16   : > { %p5137_p13 = scmp.ne.s32.totalorder %s6029_s5, %s5136_s18  ;;  %p5143_p3 = scmp.lt.u32.totalorder %s5136_s18, %s6029_s5 }
  0x17   : > { %p5385_p12 = pnand %p6035_p9, %p4915_p11 }
  0x19   : > { %p5138_p0 = pneg %p5385_p12 }
  0x1b   : > { %p5139_p1 = pnand %p5138_p0, %p5137_p13 }
  0x1d   : > { %p5140_p2 = pneg %p5139_p1 }
  0x1f   : > { %p5145_p4 = pnand %p5143_p3, %p5140_p2 }
  0x21   : > { %5148 = shalt.err (!%p5145_p4)
}
  0x22   : > { %s5149_s29 = scalar_lea.vmem %s296_s27, 4608  ;;  %p5157_p9 = scmp.lt.s32.totalorder %s296_s27, %s296_s27 }
  0x23   : > { %p5150_p7 = scmp.ne.s32.totalorder %s296_s27, %s5149_s29  ;;  %p5158_p6 = scmp.lt.s32.totalorder %s5149_s29, %s5149_s29 }
  0x25   : > { %p5152_p8 = pnand %p5150_p7, %p5138_p0  ;;  %p5159_p5 = por %p5158_p6, %p5157_p9 }
  0x27   : > { %p5153_p11 = pneg %p5152_p8 }
  0x29   : > { %p5160_p10 = pnand %p5159_p5, %p5153_p11 }
  0x2b   : > { %5163 = shalt.err (!%p5160_p10)
}
  0x2c   : > { %s5266_s11 = smov 64   ;;  %s5267_s12 = smov 4  }
  0x2d   : > { %4918 = dma.hbm_to_vmem [thread:$0]  (!%p5385_p12), %s6029_s5, 4608, %s296_s27, [#allocation3], %s5266_s11, %s5266_s11, %s5267_s12  }
  0x2e   : > { %s5164_s26 = scalar_lea.hbm %s6032_s8, 4608 }
  0x2f   : > { %p5165_p13 = scmp.ne.s32.totalorder %s6032_s8, %s5164_s26  ;;  %p5171_p9 = scmp.lt.u32.totalorder %s5164_s26, %s6032_s8 }
  0x31   : > { %p5167_p5 = pnand %p5165_p13, %p5138_p0 }
  0x33   : > { %p5168_p6 = pneg %p5167_p5 }
  0x35   : > { %p5173_p10 = pnand %p5171_p9, %p5168_p6 }
  0x37   : > { %5176 = shalt.err (!%p5173_p10)
}
  0x38   : > { %s5177_s27 = scalar_lea.vmem %s5389_s30, 4608  ;;  %p5185_p4 = scmp.lt.s32.totalorder %s5389_s30, %s5389_s30 }
  0x39   : > { %p5178_p1 = scmp.ne.s32.totalorder %s5389_s30, %s5177_s27  ;;  %p5186_p7 = scmp.lt.s32.totalorder %s5177_s27, %s5177_s27 }
  0x3b   : > { %p5180_p2 = pnand %p5178_p1, %p5138_p0  ;;  %p5187_p8 = por %p5186_p7, %p5185_p4 }
  0x3d   : > { %p5181_p3 = pneg %p5180_p2 }
  0x3f   : > { %p5188_p11 = pnand %p5187_p8, %p5181_p3 }
  0x41   : > { %5191 = shalt.err (!%p5188_p11)
}
  0x42   : > { %4921 = dma.hbm_to_vmem [thread:$0]  (!%p5385_p12), %s6032_s8, 4608, %s5389_s30, [#allocation6], %s5266_s11, %s5266_s11, %s5267_s12  }
  0x43   : > { %p6050_p13 = scmp.ne.s32.totalorder %s6048_s25, 0 }
  0x44   : > { %p6051_p5 = scmp.eq.s32.totalorder (!%p6050_p13), %s5349_s17, 0 }
  0x45   : > { %340 = sbr.rel (%p6050_p13) target bundleno = 1825 (0x721), region = 60 }
  0x4c   : > { %5237 = dma.done.wait (%p6051_p5), [#allocation3], 4608   ;;  %p6052_p0 = pmov %p6051_p5 }
  0x4e   : > { %5239 = vsyncadd (%p6052_p0), [#allocation3], 4294962688  ;;  %p6053_p6 = pmov %p6052_p0 }
  0x4f   : > { %p6054_p9 = pmov %p6052_p0 }
  0x50   : > { %5241 = dma.done.wait (%p6053_p6), [#allocation6], 4608  }
  0x51   : > { %5243 = vsyncadd (%p6054_p9), [#allocation6], 4294962688  ;;  %p381_p10 = scmp.lt.s32.totalorder %s5349_s17, 1  ;;  %v5268_v0 = vmov 0.0   ;;  %vm5269_vm0 = vmmov 0   ;;  %vm478_vm1 = vcmask 1043456  }
  0x52   : > { %4399 = vmatprep.subr.bf16.mxu0 %v5268_v0  ;;  %4401 = vmatprep.mubr.msk.bf16.mxu0 %vm5269_vm0, %v5268_v0  ;;  %v4971_v3 = vld [vmem:[%s6025_s1] sm:$0xff]   ;;  %vm450_vm2 = vcmask 64512   ;;  %v4972_v4 = vld [vmem:[%s6025_s1 + $0x8] sm:$0xff]   ;;  %v4973_v7 = vld [vmem:[%s6025_s1 + $0x10] sm:$0xff]   ;;  %vm637_vm3 = vcmask 523264   ;;  %vm1451_vm4 = vcmask 130048  }
  0x53   : > { %s382_s24 = scalar_select %p381_p10, %s5349_s17, 1  ;;  %4437 = vmatprep.subr.bf16.mxu1 %v5268_v0  ;;  %4445 = vmatprep.mubr.msk.bf16.mxu1 %vm5269_vm0, %v5268_v0  ;;  %v4980_v5 = vld [vmem:[%s6026_s2 + $0x80] sm:$0xff]   ;;  %v4974_v8 = vld [vmem:[%s6025_s1 + $0x18] sm:$0xff]   ;;  %v4976_v10 = vld [vmem:[%s6025_s1 + $0x28] sm:$0xff]   ;;  %vm2683_vm7 = vcmask 261120  }
  0x54   : > { %v4981_v6 = vld [vmem:[%s6026_s2 + $0x20] sm:$0xff]   ;;  %v4977_v11 = vld [vmem:[%s6025_s1 + $0x30] sm:$0xff]   ;;  %v4978_v12 = vld [vmem:[%s6025_s1 + $0x38] sm:$0xff]   ;;  %s378_s22 = sand.u32 1, %s5254_s14   ;;  %s4196_s27 = sshll.u32 %s5349_s17, 9 }
  0x55   : > { %s3874_s25 = sshll.u32 %s382_s24, 2  ;;  %4438 = vmatpush3.bf16.msra.mxu1 %v4981_v6  ;;  %v4975_v9 = vld [vmem:[%s6025_s1 + $0x20] sm:$0xff]   ;;  %v4982_v14 = vld [vmem:[%s6026_s2 + $0x28] sm:$0xff]   ;;  %v4983_v15 = vld [vmem:[%s6026_s2 + $0x30] sm:$0xff]   ;;  %s3873_s18 = sshll.u32 %s378_s22, 5 }
  0x56   : > { %s384_s11 = scalar_lea.vmem %s6024_s0, %s3874_s25  ;;  %4439 = vmatprep.subr.bf16.mxu1 %v5268_v0  ;;  %v4979_v13 = vld [vmem:[%s6025_s1 + $0x40] sm:$0xff]   ;;  %v4984_v16 = vld [vmem:[%s6026_s2 + $0x38] sm:$0xff]   ;;  %v4986_v17 = vld [vmem:[%s6026_s2 + $0x88] sm:$0xff]   ;;  %s380_s26 = scalar_lea.vmem [#allocation7], %s3873_s18 }
  0x57   : > { %v386_v1 = vld [vmem:[%s384_s11] sm:$0xf]  ;;  %v4991_v18 = vld [vmem:[%s6026_s2 + $0x90] sm:$0xff]   ;;  %v4997_v19 = vld [vmem:[%s6026_s2 + $0x98] sm:$0xff]   ;;  %s3781_s29 = sshll.u32 %s380_s26, 4  ;;  %s5978_s24 = scalar_lea.hbm %s6034_s10, %s4196_s27  ;;  %s5973_s29 = int_to_ptr.vmem [resolvable:$true] %s3781_s29 }
  0x58   : > { %v480_v2 = vsel %vm478_vm1, %v386_v1, 0  ;;  %v4985_v28 = vld [vmem:[%s6026_s2] sm:$0xff]   ;;  %v4987_v31 = vld [vmem:[%s6026_s2 + $0x8] sm:$0xff]   ;;  %v4988_v34 = vld [vmem:[%s6026_s2 + $0x10] sm:$0xff]   ;;  %s5983_s17 = scalar_lea.sflag [#allocation4], %s378_s22  ;;  %s5192_s25 = scalar_lea.vmem %s5973_s29, 512 }
  0x59   : > { %4400 = vmatpush3.bf16.msra.mxu0 %v480_v2  ;;  %4440 = vmatpush3.bf16.msra.mxu1 %v4982_v14  ;;  %v4989_v38 = vld [vmem:[%s6026_s2 + $0x18] sm:$0xff]   ;;  %v4990_v41 = vld [vmem:[%s6026_s2 + $0x40] sm:$0xff]   ;;  %v4992_v45 = vld [vmem:[%s6026_s2 + $0x48] sm:$0xff]   ;;  %p5193_p12 = scmp.ne.s32.totalorder %s5973_s29, %s5192_s25  ;;  %p6055_p1 = scmp.ne.s32.totalorder %s6045_s23, 0 }
  0x5a   : > { %4485 = vmatprep.subr.bf16.mxu0 %v5268_v0  ;;  %4441 = vmatprep.subr.bf16.mxu1 %v5268_v0  ;;  %v4993_v48 = vld [vmem:[%s6026_s2 + $0x50] sm:$0xff]   ;;  %v5000_v50 = vld [vmem:[%s6026_s2 + $0xc0] sm:$0xff]   ;;  %v4994_v53 = vld [vmem:[%s6026_s2 + $0x58] sm:$0xff]   ;;  %s5270_s28 = smov [#allocation7]  }
  0x5b   : > { %v5002_v54 = vld [vmem:[%s6026_s2 + $0xc8] sm:$0xff]   ;;  %v4995_v57 = vld [vmem:[%s6026_s2 + $0x60] sm:$0xff]   ;;  %v5004_v61 = vld [vmem:[%s6026_s2 + $0xd0] sm:$0xff]   ;;  %p5194_p2 = pnand %p5193_p12, %p6055_p1  ;;  %s5196_s30 = sshll.u32 %s5270_s28, 4  ;;  %s5197_s30 = int_to_ptr.vmem [resolvable:$false] %s5196_s30 }
  0x5c   : > { %4402 = vmatmul.mubr.msk.bf16.vlgmr.msra.gmra.mrb[0].mxu0 %vm450_vm2, %v4971_v3  ;;  %v4996_v62 = vld [vmem:[%s6026_s2 + $0x68] sm:$0xff]   ;;  %v5006_v63 = vld [vmem:[%s6026_s2 + $0xd8] sm:$0xff]   ;;  %v4998_v3 = vld [vmem:[%s6026_s2 + $0x70] sm:$0xff]   ;;  %s5198_s11 = scalar_lea.vmem %s5197_s30, 1024  ;;  %p5199_p4 = scmp.lt.s32.totalorder %s5973_s29, %s5197_s30 }
  0x5d   : > { %4405 = vmatprep.mubr.msk.bf16.mxu0 %vm5269_vm0, %v5268_v0  ;;  %4486 = vmatpush3.bf16.msra.mxu0 %v4980_v5  ;;  %p5195_p3 = pneg %p5194_p2  ;;  %p5200_p7 = scmp.lt.s32.totalorder %s5198_s11, %s5192_s25 }
  0x5e   : > { %4487 = vmatprep.subr.bf16.mxu0 %v5268_v0  ;;  %4442 = vmatpush3.bf16.msra.mxu1 %v4983_v15 }
  0x5f   : > { %4443 = vmatprep.subr.bf16.mxu1 %v5268_v0  ;;  %p5201_p8 = por %p5200_p7, %p5199_p4 }
  0x61   : > { %4488 = vmatpush3.bf16.msra.mxu0 %v4986_v17  ;;  %v5003_v17 = vld [vmem:[%s6026_s2 + $0xa8] sm:$0xff]   ;;  %p5202_p11 = pnand %p5201_p8, %p5195_p3 }
  0x62   : > { %4444 = vmatpush3.bf16.msra.mxu1 %v4984_v16  ;;  %4489 = vmatprep.subr.bf16.mxu0 %v5268_v0  ;;  %v5012_v16 = vld [vmem:[%s6026_s2 + $0x110] sm:$0xff]  }
  0x63   : > { %4449 = vmatprep.subr.bf16.mxu1 %v5268_v0 }
  0x64   : > { %4406 = vmatmul.mubr.msk.bf16.gmra.mrb[4].mxu0 %vm450_vm2, %v4972_v4 }
  0x65   : > { %4409 = vmatprep.mubr.msk.bf16.mxu0 %vm5269_vm0, %v5268_v0  ;;  %4490 = vmatpush3.bf16.msra.mxu0 %v4991_v18  ;;  %v5014_v18 = vld [vmem:[%s6026_s2 + $0x118] sm:$0xff]  }
  0x66   : > { %4491 = vmatprep.subr.bf16.mxu0 %v5268_v0 }
  0x69   : > { %4492 = vmatpush3.bf16.msra.mxu0 %v4997_v19 }
  0x6a   : > { %4509 = vmatprep.subr.bf16.mxu0 %v5268_v0 }
  0x6c   : > { %4410 = vmatmul.mubr.msk.bf16.gmra.mrb[8].mxu0 %vm450_vm2, %v4973_v7  ;;  %v5008_v7 = vld [vmem:[%s6026_s2 + $0x100] sm:$0xff]  }
  0x6d   : > { %4413 = vmatprep.mubr.msk.bf16.mxu0 %vm5269_vm0, %v5268_v0 }
  0x74   : > { %4414 = vmatmul.mubr.msk.bf16.gmra.mrb[12].mxu0 %vm450_vm2, %v4974_v8  ;;  %v4999_v8 = vld [vmem:[%s6026_s2 + $0x78] sm:$0xff]  }
  0x75   : > { %4417 = vmatprep.mubr.msk.bf16.mxu0 %vm5269_vm0, %v5268_v0 }
  0x7c   : > { %4418 = vmatmul.mubr.msk.bf16.gmra.mrb[16].mxu0 %vm450_vm2, %v4975_v9  ;;  %v5010_v9 = vld [vmem:[%s6026_s2 + $0x108] sm:$0xff]  }
  0x7d   : > { %4421 = vmatprep.mubr.msk.bf16.mxu0 %vm5269_vm0, %v5268_v0 }
  0x84   : > { %4422 = vmatmul.mubr.msk.bf16.gmra.mrb[20].mxu0 %vm450_vm2, %v4976_v10 }
  0x85   : > { %4425 = vmatprep.mubr.msk.bf16.mxu0 %vm5269_vm0, %v5268_v0 }
  0x8c   : > { %4426 = vmatmul.mubr.msk.bf16.gmra.mrb[24].mxu0 %vm450_vm2, %v4977_v11 }
  0x8d   : > { %4429 = vmatprep.mubr.msk.bf16.mxu0 %vm5269_vm0, %v5268_v0 }
  0x94   : > { %4430 = vmatmul.mubr.msk.bf16.gmra.mrb[28].mxu0 %vm450_vm2, %v4978_v12  ;;  %v5001_v12 = vld [vmem:[%s6026_s2 + $0xa0] sm:$0xff]  }
  0x95   : > { %4433 = vmatprep.mubr.msk.bf16.mxu0 %vm5269_vm0, %v5268_v0 }
  0x9c   : > { %4434 = vmatmul.mubr.msk.bf16.gmra.mrb[32].mxu0 %vm450_vm2, %v4979_v13 }
  0x9d   : > { %4493 = vmatprep.mubr.msk.bf16.mxu0 %vm5269_vm0, %v5268_v0 }
 0x12f   : > { %v516_v20 = vpop.f32.mrb[0].mxu0 }
 0x130   : > { %v4403_v21 = vpop.f32.mrb[1].mxu0 }
 0x131   : > { %v519_v22 = vpop.f32.mrb[2].mxu0  ;;  %v5005_v21 = vld [vmem:[%s6026_s2 + $0xb0] sm:$0xff]  }
 0x132   : > { %v587_v23 = vpack.c.bf16 %v519_v22, %v516_v20  ;;  %v4404_v24 = vpop.f32.mrb[3].mxu0 }
 0x137   : > { %v524_v25 = vpop.f32.mrb[4].mxu0 }
 0x138   : > { %v4407_v26 = vpop.f32.mrb[5].mxu0 }
 0x139   : > { %v527_v27 = vpop.f32.mrb[6].mxu0  ;;  %v5009_v26 = vld [vmem:[%s6026_s2 + $0xe0] sm:$0xff]  }
 0x13a   : > { %v588_v29 = vpack.c.bf16 %v527_v27, %v524_v25  ;;  %v4408_v30 = vpop.f32.mrb[7].mxu0  ;;  %v5007_v25 = vld [vmem:[%s6026_s2 + $0xb8] sm:$0xff]   ;;  %v5011_v27 = vld [vmem:[%s6026_s2 + $0xe8] sm:$0xff]  }
 0x13b   : > { %v5016_v30 = vld [vmem:[%s6028_s4] sm:$0xff]  }
 0x13c   : > { %4446 = vmatmul.mubr.msk.bf16.vlgmr.msra.gmra.mrb[0].mxu1 %vm637_vm3, %v588_v29  ;;  %v5015_v29 = vld [vmem:[%s6026_s2 + $0xf8] sm:$0xff]  }
 0x13d   : > { %4450 = vmatpush3.bf16.msra.mxu1 %v4985_v28  ;;  %4457 = vmatprep.mubr.msk.bf16.mxu1 %vm5269_vm0, %v5268_v0  ;;  %v5013_v28 = vld [vmem:[%s6026_s2 + $0xf0] sm:$0xff]  }
 0x13e   : > { %4451 = vmatprep.subr.bf16.mxu1 %v5268_v0 }
 0x13f   : > { %v532_v32 = vpop.f32.mrb[8].mxu0 }
 0x140   : > { %v4411_v33 = vpop.f32.mrb[9].mxu0 }
 0x141   : > { %4452 = vmatpush3.bf16.msra.mxu1 %v4987_v31  ;;  %v535_v35 = vpop.f32.mrb[10].mxu0 }
 0x142   : > { %4453 = vmatprep.subr.bf16.mxu1 %v5268_v0  ;;  %v589_v36 = vpack.c.bf16 %v535_v35, %v532_v32  ;;  %v4412_v37 = vpop.f32.mrb[11].mxu0 }
 0x145   : > { %4454 = vmatpush3.bf16.msra.mxu1 %v4988_v34 }
 0x146   : > { %4455 = vmatprep.subr.bf16.mxu1 %v5268_v0 }
 0x147   : > { %v5564_v39 = vpop.f32.mrb[12].mxu0 }
 0x148   : > { %v4415_v40 = vpop.f32.mrb[13].mxu0 }
 0x149   : > { %4456 = vmatpush3.bf16.msra.mxu1 %v4989_v38  ;;  %v5569_v42 = vpop.f32.mrb[14].mxu0 }
 0x14a   : > { %4461 = vmatprep.subr.bf16.mxu1 %v5268_v0  ;;  %v590_v43 = vpack.c.bf16 %v5569_v42, %v5564_v39  ;;  %v4416_v44 = vpop.f32.mrb[15].mxu0 }
 0x14c   : > { %4458 = vmatmul.mubr.msk.bf16.vlgmr.msra.gmra.mrb[4].mxu1 %vm637_vm3, %v587_v23 }
 0x14d   : > { %4462 = vmatpush3.bf16.msra.mxu1 %v4990_v41  ;;  %4469 = vmatprep.mubr.msk.bf16.mxu1 %vm5269_vm0, %v5268_v0 }
 0x14e   : > { %4463 = vmatprep.subr.bf16.mxu1 %v5268_v0 }
 0x14f   : > { %v548_v46 = vpop.f32.mrb[16].mxu0 }
 0x150   : > { %v4419_v47 = vpop.f32.mrb[17].mxu0 }
 0x151   : > { %4464 = vmatpush3.bf16.msra.mxu1 %v4992_v45  ;;  %v551_v49 = vpop.f32.mrb[18].mxu0 }
 0x152   : > { %4465 = vmatprep.subr.bf16.mxu1 %v5268_v0  ;;  %v591_v51 = vpack.c.bf16 %v551_v49, %v548_v46  ;;  %v4420_v52 = vpop.f32.mrb[19].mxu0 }
 0x154   : > { %4494 = vmatmul.mubr.msk.bf16.vlgmr.msra.gmra.mrb[36].mxu0 %vm637_vm3, %v591_v51  ;;  %v5032_v51 = vld [vmem:[%s6028_s4 + $0x80] sm:$0xff]  }
 0x155   : > { %4466 = vmatpush3.bf16.msra.mxu1 %v4993_v48  ;;  %4510 = vmatpush3.bf16.msra.mxu0 %v5000_v50 }
 0x156   : > { %4467 = vmatprep.subr.bf16.mxu1 %v5268_v0  ;;  %4511 = vmatprep.subr.bf16.mxu0 %v5268_v0 }
 0x157   : > { %v5597_v55 = vpop.f32.mrb[20].mxu0  ;;  %4517 = vmatprep.mubr.msk.bf16.mxu0 %vm5269_vm0, %v5268_v0 }
 0x158   : > { %v4423_v56 = vpop.f32.mrb[21].mxu0 }
 0x159   : > { %4468 = vmatpush3.bf16.msra.mxu1 %v4994_v53  ;;  %4512 = vmatpush3.bf16.msra.mxu0 %v5002_v54  ;;  %v5604_v58 = vpop.f32.mrb[22].mxu0 }
 0x15a   : > { %4473 = vmatprep.subr.bf16.mxu1 %v5268_v0  ;;  %v592_v59 = vpack.c.bf16 %v5604_v58, %v5597_v55  ;;  %v4424_v60 = vpop.f32.mrb[23].mxu0  ;;  %4513 = vmatprep.subr.bf16.mxu0 %v5268_v0 }
 0x15c   : > { %4470 = vmatmul.mubr.msk.bf16.vlgmr.msra.gmra.mrb[8].mxu1 %vm637_vm3, %v589_v36 }
 0x15d   : > { %4474 = vmatpush3.bf16.msra.mxu1 %v4995_v57  ;;  %4481 = vmatprep.mubr.msk.bf16.mxu1 %vm5269_vm0, %v5268_v0 }
 0x15e   : > { %4475 = vmatprep.subr.bf16.mxu1 %v5268_v0  ;;  %4514 = vmatpush3.bf16.msra.mxu0 %v5004_v61 }
 0x15f   : > { %v564_v1 = vpop.f32.mrb[24].mxu0  ;;  %4515 = vmatprep.subr.bf16.mxu0 %v5268_v0 }
 0x160   : > { %v4427_v2 = vpop.f32.mrb[25].mxu0 }
 0x161   : > { %4476 = vmatpush3.bf16.msra.mxu1 %v4996_v62  ;;  %v567_v4 = vpop.f32.mrb[26].mxu0 }
 0x162   : > { %4477 = vmatprep.subr.bf16.mxu1 %v5268_v0  ;;  %v593_v5 = vpack.c.bf16 %v567_v4, %v564_v1  ;;  %4516 = vmatpush3.bf16.msra.mxu0 %v5006_v63  ;;  %v4428_v6 = vpop.f32.mrb[27].mxu0 }
 0x163   : > { %4533 = vmatprep.subr.bf16.mxu0 %v5268_v0 }
 0x165   : > { %4478 = vmatpush3.bf16.msra.mxu1 %v4998_v3  ;;  %4518 = vmatmul.mubr.msk.bf16.vlgmr.msra.gmra.mrb[40].mxu0 %vm637_vm3, %v593_v5 }
 0x166   : > { %4479 = vmatprep.subr.bf16.mxu1 %v5268_v0  ;;  %4534 = vmatpush3.bf16.msra.mxu0 %v5008_v7 }
 0x167   : > { %4535 = vmatprep.subr.bf16.mxu0 %v5268_v0  ;;  %v572_v10 = vpop.f32.mrb[28].mxu0  ;;  %4541 = vmatprep.mubr.msk.bf16.mxu0 %vm5269_vm0, %v5268_v0 }
 0x168   : > { %v4431_v11 = vpop.f32.mrb[29].mxu0 }
 0x169   : > { %4480 = vmatpush3.bf16.msra.mxu1 %v4999_v8  ;;  %v575_v13 = vpop.f32.mrb[30].mxu0 }
 0x16a   : > { %4497 = vmatprep.subr.bf16.mxu1 %v5268_v0  ;;  %4536 = vmatpush3.bf16.msra.mxu0 %v5010_v9  ;;  %v594_v14 = vpack.c.bf16 %v575_v13, %v572_v10  ;;  %v4432_v15 = vpop.f32.mrb[31].mxu0 }
 0x16b   : > { %4537 = vmatprep.subr.bf16.mxu0 %v5268_v0  ;;  %v4002_v15 = vld [vmem:[%s6027_s3] ss:$0 sm:$0xff] }
 0x16c   : > { %4482 = vmatmul.mubr.msk.bf16.vlgmr.msra.gmra.mrb[12].mxu1 %vm637_vm3, %v590_v43 }
 0x16d   : > { %4498 = vmatpush3.bf16.msra.mxu1 %v5001_v12  ;;  %4505 = vmatprep.mubr.msk.bf16.mxu1 %vm5269_vm0, %v5268_v0 }
 0x16e   : > { %4499 = vmatprep.subr.bf16.mxu1 %v5268_v0  ;;  %4538 = vmatpush3.bf16.msra.mxu0 %v5012_v16 }
 0x16f   : > { %v580_v19 = vpop.f32.mrb[32].mxu0  ;;  %4539 = vmatprep.subr.bf16.mxu0 %v5268_v0 }
 0x170   : > { %v4435_v20 = vpop.f32.mrb[33].mxu0 }
 0x171   : > { %4500 = vmatpush3.bf16.msra.mxu1 %v5003_v17  ;;  %v583_v22 = vpop.f32.mrb[34].mxu0 }
 0x172   : > { %4501 = vmatprep.subr.bf16.mxu1 %v5268_v0  ;;  %v595_v23 = vpack.c.bf16 %v583_v22, %v580_v19  ;;  %4540 = vmatpush3.bf16.msra.mxu0 %v5014_v18  ;;  %v4436_v24 = vpop.f32.mrb[35].mxu0 }
 0x175   : > { %4502 = vmatpush3.bf16.msra.mxu1 %v5005_v21  ;;  %4542 = vmatmul.mubr.msk.bf16.vlgmr.msra.gmra.mrb[44].mxu0 %vm637_vm3, %v595_v23 }
 0x176   : > { %4503 = vmatprep.subr.bf16.mxu1 %v5268_v0  ;;  %4547 = vmatprep.mubr.msk.bf16.mxu0 %vm1451_vm4, %v5016_v30 }
 0x179   : > { %4504 = vmatpush3.bf16.msra.mxu1 %v5007_v25 }
 0x17a   : > { %4521 = vmatprep.subr.bf16.mxu1 %v5268_v0 }
 0x17c   : > { %4506 = vmatmul.mubr.msk.bf16.vlgmr.msra.gmra.mrb[16].mxu1 %vm637_vm3, %v592_v59 }
 0x17d   : > { %4522 = vmatpush3.bf16.msra.mxu1 %v5009_v26  ;;  %4529 = vmatprep.mubr.msk.bf16.mxu1 %vm5269_vm0, %v5268_v0 }
 0x17e   : > { %4523 = vmatprep.subr.bf16.mxu1 %v5268_v0 }
 0x181   : > { %4524 = vmatpush3.bf16.msra.mxu1 %v5011_v27 }
 0x182   : > { %4525 = vmatprep.subr.bf16.mxu1 %v5268_v0 }
 0x185   : > { %4526 = vmatpush3.bf16.msra.mxu1 %v5013_v28 }
 0x186   : > { %4527 = vmatprep.subr.bf16.mxu1 %v5268_v0 }
 0x189   : > { %4528 = vmatpush3.bf16.msra.mxu1 %v5015_v29 }
 0x18c   : > { %4530 = vmatmul.mubr.msk.bf16.vlgmr.msra.gmra.mrb[20].mxu1 %vm637_vm3, %v594_v14 }
 0x18d   : > { %4579 = vmatprep.mubr.msk.bf16.mxu1 %vm1451_vm4, %v5032_v51  ;;  %v5031_v51 = vld [vmem:[%s6028_s4 + $0x78] sm:$0xff]  }
 0x20f   : > { %v675_v31 = vpop.f32.mrb[0].mxu1 }
 0x210   : > { %v4447_v32 = vpop.f32.mrb[1].mxu1 }
 0x211   : > { %v678_v33 = vpop.f32.mrb[2].mxu1 }
 0x212   : > { %v4448_v34 = vpop.f32.mrb[3].mxu1 }
 0x213   : > { %v5034_v34 = vld [vmem:[#allocation2 + $0x20] sm:$0xff]  }
 0x21f   : > { %v743_v35 = vpop.f32.mrb[4].mxu1 }
 0x220   : > { %v744_v36 = vadd.f32 %v743_v35, %v675_v31  ;;  %v4459_v37 = vpop.f32.mrb[5].mxu1  ;;  %v5017_v35 = vld [vmem:[%s6028_s4 + $0x8] sm:$0xff]  }
 0x221   : > { %v746_v38 = vpop.f32.mrb[6].mxu1  ;;  %v5018_v37 = vld [vmem:[%s6028_s4 + $0x10] sm:$0xff]  }
 0x222   : > { %v747_v39 = vadd.f32 %v746_v38, %v678_v33  ;;  %v4460_v0 = vpop.f32.mrb[7].mxu1  ;;  %v5035_v38 = vld [vmem:[#allocation2 + $0x28] sm:$0xff]  }
 0x223   : > { %v5019_v0 = vld [vmem:[%s6028_s4 + $0x18] sm:$0xff]  }
 0x227   : > { %v978_v40 = vpop.f32.mrb[36].mxu0 }
 0x228   : > { %v4495_v41 = vpop.f32.mrb[37].mxu0 }
 0x229   : > { %v981_v42 = vpop.f32.mrb[38].mxu0  ;;  %v5021_v41 = vld [vmem:[%s6028_s4 + $0x28] sm:$0xff]  }
 0x22a   : > { %v4496_v43 = vpop.f32.mrb[39].mxu0 }
 0x22b   : > { %v5023_v43 = vld [vmem:[%s6028_s4 + $0x38] sm:$0xff]  }
 0x22f   : > { %v820_v44 = vpop.f32.mrb[8].mxu1 }
 0x230   : > { %v827_v45 = vadd.f32 %v820_v44, %v744_v36  ;;  %v4471_v46 = vpop.f32.mrb[9].mxu1  ;;  %v5033_v36 = vld [vmem:[%s6028_s4 + $0x88] sm:$0xff]   ;;  %v5024_v44 = vld [vmem:[%s6028_s4 + $0x40] sm:$0xff]  }
 0x231   : > { %v823_v47 = vpop.f32.mrb[10].mxu1  ;;  %v5026_v46 = vld [vmem:[%s6028_s4 + $0x50] sm:$0xff]  }
 0x232   : > { %v828_v48 = vadd.f32 %v823_v47, %v747_v39  ;;  %v4472_v49 = vpop.f32.mrb[11].mxu1  ;;  %v5036_v39 = vld [vmem:[#allocation2 + $0x30] sm:$0xff]   ;;  %v5027_v47 = vld [vmem:[%s6028_s4 + $0x58] sm:$0xff]  }
 0x233   : > { %v5029_v49 = vld [vmem:[%s6028_s4 + $0x68] sm:$0xff]  }
 0x238   : > { %v1136_v50 = vpop.f32.mrb[40].mxu0 }
 0x239   : > { %v4519_v52 = vpop.f32.mrb[41].mxu0 }
 0x23a   : > { %v1139_v53 = vpop.f32.mrb[42].mxu0  ;;  %v5037_v52 = vld [vmem:[#allocation2 + $0x38] sm:$0xff]  }
 0x23b   : > { %v4520_v54 = vpop.f32.mrb[43].mxu0 }
 0x23f   : > { %v899_v55 = vpop.f32.mrb[12].mxu1 }
 0x240   : > { %v906_v56 = vadd.f32 %v899_v55, %v827_v45  ;;  %v4483_v57 = vpop.f32.mrb[13].mxu1  ;;  %v5025_v45 = vld [vmem:[%s6028_s4 + $0x48] sm:$0xff]  }
 0x241   : > { %v902_v58 = vpop.f32.mrb[14].mxu1 }
 0x242   : > { %v907_v59 = vadd.f32 %v902_v58, %v828_v48  ;;  %v4484_v60 = vpop.f32.mrb[15].mxu1  ;;  %v985_v61 = vadd.f32 %v978_v40, %v906_v56  ;;  %v5020_v40 = vld [vmem:[%s6028_s4 + $0x20] sm:$0xff]  }
 0x243   : > { %v5028_v48 = vld [vmem:[%s6028_s4 + $0x60] sm:$0xff]  }
 0x244   : > { %v986_v62 = vadd.f32 %v981_v42, %v907_v59  ;;  %v5022_v42 = vld [vmem:[%s6028_s4 + $0x30] sm:$0xff]  }
 0x248   : > { %v1294_v63 = vpop.f32.mrb[44].mxu0 }
 0x249   : > { %v4543_v1 = vpop.f32.mrb[45].mxu0 }
 0x24a   : > { %v1297_v2 = vpop.f32.mrb[46].mxu0 }
 0x24b   : > { %v4544_v3 = vpop.f32.mrb[47].mxu0 }
 0x24f   : > { %v1057_v4 = vpop.f32.mrb[16].mxu1 }
 0x250   : > { %v1064_v5 = vadd.f32 %v1057_v4, %v985_v61  ;;  %v4507_v6 = vpop.f32.mrb[17].mxu1 }
 0x251   : > { %v1060_v7 = vpop.f32.mrb[18].mxu1 }
 0x252   : > { %v1065_v8 = vadd.f32 %v1060_v7, %v986_v62  ;;  %v4508_v9 = vpop.f32.mrb[19].mxu1  ;;  %v1143_v10 = vadd.f32 %v1136_v50, %v1064_v5  ;;  %v5030_v50 = vld [vmem:[%s6028_s4 + $0x70] sm:$0xff]  }
 0x253   : > { %v5039_v9 = vld [vmem:[#allocation2 + $0x8] sm:$0xff]  }
 0x254   : > { %v1144_v11 = vadd.f32 %v1139_v53, %v1065_v8  ;;  %v5038_v53 = vld [vmem:[#allocation2] sm:$0xff]  }
 0x25f   : > { %v1215_v12 = vpop.f32.mrb[20].mxu1 }
 0x260   : > { %v1222_v13 = vadd.f32 %v1215_v12, %v1143_v10  ;;  %v4531_v14 = vpop.f32.mrb[21].mxu1 }
 0x261   : > { %v1218_v16 = vpop.f32.mrb[22].mxu1 }
 0x262   : > { %v1301_v17 = vadd.f32 %v1294_v63, %v1222_v13  ;;  %v1223_v18 = vadd.f32 %v1218_v16, %v1144_v11  ;;  %v4532_v19 = vpop.f32.mrb[23].mxu1  ;;  %v5040_v11 = vld [vmem:[#allocation2 + $0x10] sm:$0xff]  }
 0x263   : > { %v5042_v19 = vld [vmem:[#allocation2 + $0x40] sm:$0xff]  }
 0x264   : > { %v1310_v20 = vadd.f32 %v4002_v15, %v1301_v17  ;;  %v1302_v21 = vadd.f32 %v1297_v2, %v1223_v18  ;;  %v5041_v17 = vld [vmem:[#allocation2 + $0x18] sm:$0xff]  }
 0x266   : > { %v1314_v22 = vmin.f32 %v1310_v20, 0.0  ;;  %v1311_v23 = vadd.f32 %v4002_v15, %v1302_v21  ;;  %vm1312_vm5 = vcmp.gt.f32.partialorder %v1310_v20, 0.0 }
 0x268   : > { %v1316_v24 = vmul.f32 1.442695, %v1314_v22  ;;  %v1315_v25 = vmin.f32 %v1311_v23, 0.0  ;;  %vm1313_vm6 = vcmp.gt.f32.partialorder %v1311_v23, 0.0 }
 0x26a   : > { %5124 = vpow2.f32 %v1316_v24  ;;  %v1318_v26 = vmul.f32 1.442695, %v1315_v25  ;;  %v5043_v25 = vld [vmem:[#allocation2 + $0x48] sm:$0xff]  }
 0x26c   : > { %5126 = vpow2.f32 %v1318_v26 }
 0x274   : > { %v5125_v27 = vpop.eup %5124 }
 0x275   : > { %v4003_v28 = vadd.f32 -1.0, %v5125_v27  ;;  %v5044_v27 = vld [vmem:[#allocation2 + $0x50] sm:$0xff]  }
 0x276   : > { %v5127_v29 = vpop.eup %5126 }
 0x277   : > { %v4004_v30 = vadd.f32 -1.0, %v5127_v29  ;;  %v1322_v31 = vsel %vm1312_vm5, %v1310_v20, %v4003_v28 }
 0x279   : > { %v1323_v32 = vsel %vm1313_vm6, %v1311_v23, %v4004_v30 }
 0x27a   : > { %v1324_v33 = vpack.c.bf16 %v1323_v32, %v1322_v31 }
 0x27c   : > { %4545 = vmatprep.subr.bf16.mxu0 %v1324_v33  ;;  %4839 = vmatprep.subr.bf16.mxu1 %v1324_v33 }
 0x27d   : > { %4546 = vmatpush3.bf16.msra.mxu0 %v1324_v33  ;;  %4840 = vmatpush3.bf16.msra.mxu1 %v1324_v33  ;;  %v5045_v33 = vld [vmem:[#allocation2 + $0x58] sm:$0xff]  }
 0x27e   : > { %4583 = vmatprep.subr.bf16.mxu0 %v5034_v34 }
 0x280   : > { %4548 = vmatmul.mubr.msk.bf16.vlgmr.msra.gmra.mrb[48].mxu0 %vm1451_vm4, %v5017_v35  ;;  %4580 = vmatmul.mubr.msk.bf16.vlgmr.msra.gmra.mrb[24].mxu1 %vm1451_vm4, %v5033_v36  ;;  %v5046_v35 = vld [vmem:[#allocation2 + $0x60] sm:$0xff]  }
 0x281   : > { %4551 = vmatprep.mubr.msk.bf16.mxu0 %vm1451_vm4, %v5018_v37  ;;  %4584 = vmatpush3.bf16.msra.mxu0 %v5034_v34 }
 0x282   : > { %4585 = vmatprep.subr.bf16.mxu0 %v5035_v38 }
 0x285   : > { %4586 = vmatpush3.bf16.msra.mxu0 %v5035_v38 }
 0x286   : > { %4587 = vmatprep.subr.bf16.mxu0 %v5036_v39 }
 0x288   : > { %4552 = vmatmul.mubr.msk.bf16.gmra.mrb[52].mxu0 %vm1451_vm4, %v5019_v0 }
 0x289   : > { %4555 = vmatprep.mubr.msk.bf16.mxu0 %vm1451_vm4, %v5020_v40  ;;  %4588 = vmatpush3.bf16.msra.mxu0 %v5036_v39  ;;  %v5047_v40 = vld [vmem:[#allocation2 + $0x68] sm:$0xff]  }
 0x28a   : > { %4589 = vmatprep.subr.bf16.mxu0 %v5037_v52 }
 0x28d   : > { %4590 = vmatpush3.bf16.msra.mxu0 %v5037_v52 }
 0x28e   : > { %4595 = vmatprep.subr.bf16.mxu0 %v5038_v53 }
 0x290   : > { %4556 = vmatmul.mubr.msk.bf16.gmra.mrb[56].mxu0 %vm1451_vm4, %v5021_v41 }
 0x291   : > { %4559 = vmatprep.mubr.msk.bf16.mxu0 %vm1451_vm4, %v5022_v42  ;;  %v5048_v42 = vld [vmem:[#allocation2 + $0x70] sm:$0xff]  }
 0x298   : > { %4560 = vmatmul.mubr.msk.bf16.gmra.mrb[60].mxu0 %vm1451_vm4, %v5023_v43 }
 0x299   : > { %4563 = vmatprep.mubr.msk.bf16.mxu0 %vm1451_vm4, %v5024_v44 }
 0x2a0   : > { %4564 = vmatmul.mubr.msk.bf16.gmra.mrb[64].mxu0 %vm1451_vm4, %v5025_v45 }
 0x2a1   : > { %4567 = vmatprep.mubr.msk.bf16.mxu0 %vm1451_vm4, %v5026_v46 }
 0x2a8   : > { %4568 = vmatmul.mubr.msk.bf16.gmra.mrb[68].mxu0 %vm1451_vm4, %v5027_v47 }
 0x2a9   : > { %4571 = vmatprep.mubr.msk.bf16.mxu0 %vm1451_vm4, %v5028_v48  ;;  %v5049_v48 = vld [vmem:[#allocation2 + $0x78] sm:$0xff]  }
 0x2b0   : > { %4572 = vmatmul.mubr.msk.bf16.gmra.mrb[72].mxu0 %vm1451_vm4, %v5029_v49 }
 0x2b1   : > { %4575 = vmatprep.mubr.msk.bf16.mxu0 %vm1451_vm4, %v5030_v50  ;;  %v5050_v50 = vld [vmem:[#allocation2 + $0x80] sm:$0xff]  }
 0x2b8   : > { %4576 = vmatmul.mubr.msk.bf16.gmra.mrb[76].mxu0 %vm1451_vm4, %v5031_v51 }
 0x353   : > { %v4549_v54 = vpop.f32.mrb[48].mxu0  ;;  %v5772_v60 = vpop.f32.mrb[24].mxu1 }
 0x354   : > { %v1540_v55 = vpop.f32.mrb[49].mxu0  ;;  %v5774_v61 = vpop.f32.mrb[25].mxu1 }
 0x355   : > { %v4550_v56 = vpop.f32.mrb[50].mxu0  ;;  %v5776_v62 = vpop.f32.mrb[26].mxu1 }
 0x356   : > { %v1684_v57 = vpack.c.bf16 %v4550_v56, %v4549_v54  ;;  %v1543_v58 = vpop.f32.mrb[51].mxu0  ;;  %v1700_v1 = vpack.c.bf16 %v5776_v62, %v5772_v60  ;;  %v5780_v2 = vpop.f32.mrb[27].mxu1  ;;  %v5051_v56 = vld [vmem:[#allocation2 + $0x88] sm:$0xff]  }
 0x357   : > { %v1683_v59 = vpack.c.bf16 %v1543_v58, %v1540_v55  ;;  %v1699_v4 = vpack.c.bf16 %v5780_v2, %v5774_v61  ;;  %v5053_v58 = vld [vmem:[#allocation2 + $0x98] sm:$0xff]   ;;  %v4095_v61 = vld [vmem:[%s6030_s6] ss:$0 sm:$0xff] }
 0x35b   : > { %v4553_v63 = vpop.f32.mrb[52].mxu0 }
 0x35c   : > { %v1556_v3 = vpop.f32.mrb[53].mxu0 }
 0x35d   : > { %v4554_v5 = vpop.f32.mrb[54].mxu0 }
 0x35e   : > { %v1686_v6 = vpack.c.bf16 %v4554_v5, %v4553_v63  ;;  %v1559_v7 = vpop.f32.mrb[55].mxu0  ;;  %v5055_v63 = vld [vmem:[#allocation2 + $0xa8] sm:$0xff]   ;;  %v5057_v5 = vld [vmem:[#allocation2 + $0xb8] sm:$0xff]  }
 0x35f   : > { %v1685_v8 = vpack.c.bf16 %v1559_v7, %v1556_v3  ;;  %v5056_v3 = vld [vmem:[#allocation2 + $0xb0] sm:$0xff]   ;;  %v5059_v7 = vld [vmem:[#allocation2 + $0xc8] sm:$0xff]  }
 0x361   : > { %4591 = vmatprep.mubr.msk.bf16.mxu0 %vm637_vm3, %v1685_v8  ;;  %v5060_v8 = vld [vmem:[#allocation2 + $0xd0] sm:$0xff]  }
 0x362   : > { %4592 = vmatmul.mubr.msk.bf16.vlgmr.msra.gmra.mrb[80].mxu0 %vm637_vm3, %v1686_v6  ;;  %v5058_v6 = vld [vmem:[#allocation2 + $0xc0] sm:$0xff]  }
 0x363   : > { %4596 = vmatpush3.bf16.msra.mxu0 %v5038_v53  ;;  %4603 = vmatprep.mubr.msk.bf16.mxu0 %vm637_vm3, %v1683_v59  ;;  %v4557_v10 = vpop.f32.mrb[56].mxu0  ;;  %v5054_v59 = vld [vmem:[#allocation2 + $0xa0] sm:$0xff]  }
 0x364   : > { %4597 = vmatprep.subr.bf16.mxu0 %v5039_v9  ;;  %v1572_v12 = vpop.f32.mrb[57].mxu0 }
 0x365   : > { %v4558_v13 = vpop.f32.mrb[58].mxu0 }
 0x366   : > { %v1688_v14 = vpack.c.bf16 %v4558_v13, %v4557_v10  ;;  %v1575_v15 = vpop.f32.mrb[59].mxu0  ;;  %v5062_v10 = vld [vmem:[#allocation2 + $0xe0] sm:$0xff]   ;;  %v5065_v13 = vld [vmem:[#allocation2 + $0xf8] sm:$0xff]  }
 0x367   : > { %4598 = vmatpush3.bf16.msra.mxu0 %v5039_v9  ;;  %v1687_v16 = vpack.c.bf16 %v1575_v15, %v1572_v12  ;;  %v5061_v9 = vld [vmem:[#allocation2 + $0xd8] sm:$0xff]   ;;  %v5064_v12 = vld [vmem:[#allocation2 + $0xf0] sm:$0xff]   ;;  %v5067_v15 = vld [vmem:[#allocation2 + $0x108] sm:$0xff]  }
 0x368   : > { %4599 = vmatprep.subr.bf16.mxu0 %v5040_v11 }
 0x36b   : > { %4600 = vmatpush3.bf16.msra.mxu0 %v5040_v11  ;;  %v5787_v18 = vpop.f32.mrb[60].mxu0  ;;  %v5063_v11 = vld [vmem:[#allocation2 + $0xe8] sm:$0xff]  }
 0x36c   : > { %4601 = vmatprep.subr.bf16.mxu0 %v5041_v17  ;;  %v1588_v20 = vpop.f32.mrb[61].mxu0 }
 0x36d   : > { %v4562_v21 = vpop.f32.mrb[62].mxu0 }
 0x36e   : > { %v1690_v22 = vpack.c.bf16 %v4562_v21, %v5787_v18  ;;  %v1591_v23 = vpop.f32.mrb[63].mxu0  ;;  %v5070_v18 = vld [vmem:[%s6031_s7] sm:$0xff]  }
 0x36f   : > { %4602 = vmatpush3.bf16.msra.mxu0 %v5041_v17  ;;  %v1689_v24 = vpack.c.bf16 %v1591_v23, %v1588_v20  ;;  %v5069_v17 = vld [vmem:[#allocation2 + $0x118] sm:$0xff]   ;;  %4695 = vmatprep.mubr.msk.bf16.mxu1 %vm2683_vm7, %v5070_v18 }
 0x370   : > { %4607 = vmatprep.subr.bf16.mxu0 %v5042_v19 }
 0x372   : > { %4604 = vmatmul.mubr.msk.bf16.vlgmr.msra.gmra.mrb[80].mxu0 %vm637_vm3, %v1684_v57  ;;  %v5052_v57 = vld [vmem:[#allocation2 + $0x90] sm:$0xff]  }
 0x373   : > { %4608 = vmatpush3.bf16.msra.mxu0 %v5042_v19  ;;  %4615 = vmatprep.mubr.msk.bf16.mxu0 %vm637_vm3, %v1687_v16  ;;  %v5792_v26 = vpop.f32.mrb[64].mxu0  ;;  %v5068_v16 = vld [vmem:[#allocation2 + $0x110] sm:$0xff]  }
 0x374   : > { %4609 = vmatprep.subr.bf16.mxu0 %v5043_v25  ;;  %v1604_v28 = vpop.f32.mrb[65].mxu0 }
 0x375   : > { %v4566_v29 = vpop.f32.mrb[66].mxu0 }
 0x376   : > { %v1692_v30 = vpack.c.bf16 %v4566_v29, %v5792_v26  ;;  %v1607_v31 = vpop.f32.mrb[67].mxu0 }
 0x377   : > { %4610 = vmatpush3.bf16.msra.mxu0 %v5043_v25  ;;  %v1691_v32 = vpack.c.bf16 %v1607_v31, %v1604_v28 }
 0x378   : > { %4611 = vmatprep.subr.bf16.mxu0 %v5044_v27 }
 0x37b   : > { %4612 = vmatpush3.bf16.msra.mxu0 %v5044_v27  ;;  %v5795_v34 = vpop.f32.mrb[68].mxu0 }
 0x37c   : > { %4613 = vmatprep.subr.bf16.mxu0 %v5045_v33  ;;  %v1620_v36 = vpop.f32.mrb[69].mxu0 }
 0x37d   : > { %v4570_v37 = vpop.f32.mrb[70].mxu0 }
 0x37e   : > { %v1694_v38 = vpack.c.bf16 %v4570_v37, %v5795_v34  ;;  %v1623_v39 = vpop.f32.mrb[71].mxu0 }
 0x37f   : > { %4614 = vmatpush3.bf16.msra.mxu0 %v5045_v33  ;;  %v1693_v0 = vpack.c.bf16 %v1623_v39, %v1620_v36 }
 0x380   : > { %4619 = vmatprep.subr.bf16.mxu0 %v5046_v35 }
 0x382   : > { %4616 = vmatmul.mubr.msk.bf16.vlgmr.msra.gmra.mrb[80].mxu0 %vm637_vm3, %v1688_v14  ;;  %v5066_v14 = vld [vmem:[#allocation2 + $0x100] sm:$0xff]  }
 0x383   : > { %4620 = vmatpush3.bf16.msra.mxu0 %v5046_v35  ;;  %4627 = vmatprep.mubr.msk.bf16.mxu0 %vm637_vm3, %v1689_v24  ;;  %v5800_v41 = vpop.f32.mrb[72].mxu0 }
 0x384   : > { %4621 = vmatprep.subr.bf16.mxu0 %v5047_v40  ;;  %v1636_v43 = vpop.f32.mrb[73].mxu0 }
 0x385   : > { %v4574_v44 = vpop.f32.mrb[74].mxu0 }
 0x386   : > { %v1696_v45 = vpack.c.bf16 %v4574_v44, %v5800_v41  ;;  %v1639_v46 = vpop.f32.mrb[75].mxu0  ;;  %v5071_v44 = vld [vmem:[%s6031_s7 + $0x8] sm:$0xff]  }
 0x387   : > { %4622 = vmatpush3.bf16.msra.mxu0 %v5047_v40  ;;  %v1695_v47 = vpack.c.bf16 %v1639_v46, %v1636_v43  ;;  %v5088_v43 = vld [vmem:[#allocation5 + $0x20] sm:$0xff]   ;;  %v5089_v46 = vld [vmem:[#allocation5 + $0x28] sm:$0xff]  }
 0x388   : > { %4623 = vmatprep.subr.bf16.mxu0 %v5048_v42 }
 0x38b   : > { %4624 = vmatpush3.bf16.msra.mxu0 %v5048_v42  ;;  %v5803_v49 = vpop.f32.mrb[76].mxu0 }
 0x38c   : > { %4625 = vmatprep.subr.bf16.mxu0 %v5049_v48  ;;  %v1652_v51 = vpop.f32.mrb[77].mxu0 }
 0x38d   : > { %v5805_v52 = vpop.f32.mrb[78].mxu0 }
 0x38e   : > { %v1698_v53 = vpack.c.bf16 %v5805_v52, %v5803_v49  ;;  %v1655_v54 = vpop.f32.mrb[79].mxu0  ;;  %v5074_v49 = vld [vmem:[%s6031_s7 + $0x20] sm:$0xff]   ;;  %v5076_v52 = vld [vmem:[%s6031_s7 + $0x30] sm:$0xff]  }
 0x38f   : > { %4626 = vmatpush3.bf16.msra.mxu0 %v5049_v48  ;;  %v1697_v55 = vpack.c.bf16 %v1655_v54, %v1652_v51  ;;  %v5073_v48 = vld [vmem:[%s6031_s7 + $0x18] sm:$0xff]   ;;  %v5075_v51 = vld [vmem:[%s6031_s7 + $0x28] sm:$0xff]   ;;  %v5078_v54 = vld [vmem:[%s6031_s7 + $0x40] sm:$0xff]  }
 0x390   : > { %4631 = vmatprep.subr.bf16.mxu0 %v5050_v50 }
 0x392   : > { %4628 = vmatmul.mubr.msk.bf16.vlgmr.msra.gmra.mrb[80].mxu0 %vm637_vm3, %v1690_v22 }
 0x393   : > { %4632 = vmatpush3.bf16.msra.mxu0 %v5050_v50  ;;  %4639 = vmatprep.mubr.msk.bf16.mxu0 %vm637_vm3, %v1691_v32  ;;  %v5091_v50 = vld [vmem:[#allocation5 + $0x38] sm:$0xff]  }
 0x394   : > { %4633 = vmatprep.subr.bf16.mxu0 %v5051_v56 }
 0x397   : > { %4634 = vmatpush3.bf16.msra.mxu0 %v5051_v56  ;;  %v5080_v56 = vld [vmem:[%s6031_s7 + $0x50] sm:$0xff]  }
 0x398   : > { %4635 = vmatprep.subr.bf16.mxu0 %v5052_v57 }
 0x39b   : > { %4636 = vmatpush3.bf16.msra.mxu0 %v5052_v57  ;;  %v5081_v57 = vld [vmem:[%s6031_s7 + $0x58] sm:$0xff]  }
 0x39c   : > { %4637 = vmatprep.subr.bf16.mxu0 %v5053_v58 }
 0x39f   : > { %4638 = vmatpush3.bf16.msra.mxu0 %v5053_v58  ;;  %v5082_v58 = vld [vmem:[%s6031_s7 + $0x60] sm:$0xff]  }
 0x3a0   : > { %4643 = vmatprep.subr.bf16.mxu0 %v5054_v59 }
 0x3a2   : > { %4640 = vmatmul.mubr.msk.bf16.vlgmr.msra.gmra.mrb[80].mxu0 %vm637_vm3, %v1692_v30 }
 0x3a3   : > { %4644 = vmatpush3.bf16.msra.mxu0 %v5054_v59  ;;  %4651 = vmatprep.mubr.msk.bf16.mxu0 %vm637_vm3, %v1693_v0  ;;  %v5083_v59 = vld [vmem:[%s6031_s7 + $0x68] sm:$0xff]  }
 0x3a4   : > { %4645 = vmatprep.subr.bf16.mxu0 %v5055_v63 }
 0x3a7   : > { %4646 = vmatpush3.bf16.msra.mxu0 %v5055_v63  ;;  %v5084_v63 = vld [vmem:[%s6031_s7 + $0x70] sm:$0xff]  }
 0x3a8   : > { %4647 = vmatprep.subr.bf16.mxu0 %v5056_v3 }
 0x3ab   : > { %4648 = vmatpush3.bf16.msra.mxu0 %v5056_v3  ;;  %v5085_v3 = vld [vmem:[%s6031_s7 + $0x78] sm:$0xff]  }
 0x3ac   : > { %4649 = vmatprep.subr.bf16.mxu0 %v5057_v5 }
 0x3af   : > { %4650 = vmatpush3.bf16.msra.mxu0 %v5057_v5  ;;  %v5086_v5 = vld [vmem:[%s6031_s7 + $0x80] sm:$0xff]  }
 0x3b0   : > { %4655 = vmatprep.subr.bf16.mxu0 %v5058_v6 }
 0x3b2   : > { %4652 = vmatmul.mubr.msk.bf16.vlgmr.msra.gmra.mrb[80].mxu0 %vm637_vm3, %v1694_v38 }
 0x3b3   : > { %4656 = vmatpush3.bf16.msra.mxu0 %v5058_v6  ;;  %4663 = vmatprep.mubr.msk.bf16.mxu0 %vm637_vm3, %v1695_v47  ;;  %v5090_v47 = vld [vmem:[#allocation5 + $0x30] sm:$0xff]   ;;  %v5087_v6 = vld [vmem:[%s6031_s7 + $0x88] sm:$0xff]  }
 0x3b4   : > { %4657 = vmatprep.subr.bf16.mxu0 %v5059_v7 }
 0x3b7   : > { %4658 = vmatpush3.bf16.msra.mxu0 %v5059_v7  ;;  %v5092_v7 = vld [vmem:[#allocation5] sm:$0xff]  }
 0x3b8   : > { %4659 = vmatprep.subr.bf16.mxu0 %v5060_v8 }
 0x3bb   : > { %4660 = vmatpush3.bf16.msra.mxu0 %v5060_v8 }
 0x3bc   : > { %4661 = vmatprep.subr.bf16.mxu0 %v5061_v9 }
 0x3bf   : > { %4662 = vmatpush3.bf16.msra.mxu0 %v5061_v9 }
 0x3c0   : > { %4667 = vmatprep.subr.bf16.mxu0 %v5062_v10 }
 0x3c2   : > { %4664 = vmatmul.mubr.msk.bf16.vlgmr.msra.gmra.mrb[80].mxu0 %vm637_vm3, %v1696_v45  ;;  %v5072_v45 = vld [vmem:[%s6031_s7 + $0x10] sm:$0xff]  }
 0x3c3   : > { %4668 = vmatpush3.bf16.msra.mxu0 %v5062_v10  ;;  %4675 = vmatprep.mubr.msk.bf16.mxu0 %vm637_vm3, %v1697_v55  ;;  %v5079_v55 = vld [vmem:[%s6031_s7 + $0x48] sm:$0xff]  }
 0x3c4   : > { %4669 = vmatprep.subr.bf16.mxu0 %v5063_v11 }
 0x3c7   : > { %4670 = vmatpush3.bf16.msra.mxu0 %v5063_v11 }
 0x3c8   : > { %4671 = vmatprep.subr.bf16.mxu0 %v5064_v12 }
 0x3cb   : > { %4672 = vmatpush3.bf16.msra.mxu0 %v5064_v12 }
 0x3cc   : > { %4673 = vmatprep.subr.bf16.mxu0 %v5065_v13 }
 0x3cf   : > { %4674 = vmatpush3.bf16.msra.mxu0 %v5065_v13 }
 0x3d0   : > { %4679 = vmatprep.subr.bf16.mxu0 %v5066_v14 }
 0x3d2   : > { %4676 = vmatmul.mubr.msk.bf16.vlgmr.msra.gmra.mrb[80].mxu0 %vm637_vm3, %v1698_v53  ;;  %v5077_v53 = vld [vmem:[%s6031_s7 + $0x38] sm:$0xff]  }
 0x3d3   : > { %4680 = vmatpush3.bf16.msra.mxu0 %v5066_v14  ;;  %4687 = vmatprep.mubr.msk.bf16.mxu0 %vm637_vm3, %v1699_v4 }
 0x3d4   : > { %4681 = vmatprep.subr.bf16.mxu0 %v5067_v15 }
 0x3d7   : > { %4682 = vmatpush3.bf16.msra.mxu0 %v5067_v15 }
 0x3d8   : > { %4683 = vmatprep.subr.bf16.mxu0 %v5068_v16 }
 0x3db   : > { %4684 = vmatpush3.bf16.msra.mxu0 %v5068_v16 }
 0x3dc   : > { %4685 = vmatprep.subr.bf16.mxu0 %v5069_v17 }
 0x3df   : > { %4686 = vmatpush3.bf16.msra.mxu0 %v5069_v17 }
 0x3e2   : > { %4688 = vmatmul.mubr.msk.bf16.vlgmr.msra.gmra.mrb[80].mxu0 %vm637_vm3, %v1700_v1 }
 0x4b5   : > { %v4689_v2 = vpop.f32.mrb[80].mxu0 }
 0x4b6   : > { %v2529_v4 = vadd.f32 %v4689_v2, %v4095_v61  ;;  %v2501_v19 = vpop.f32.mrb[81].mxu0  ;;  %v5093_v2 = vld [vmem:[#allocation5 + $0x8] sm:$0xff]  }
 0x4b7   : > { %v2527_v20 = vadd.f32 %v4095_v61, %v2501_v19  ;;  %v4690_v21 = vpop.f32.mrb[82].mxu0  ;;  %v5094_v19 = vld [vmem:[#allocation5 + $0x10] sm:$0xff]  }
 0x4b8   : > { %v2537_v22 = vmin.f32 %v2529_v4, 0.0  ;;  %v2530_v60 = vadd.f32 %v4690_v21, %v4095_v61  ;;  %v2504_v62 = vpop.f32.mrb[83].mxu0  ;;  %vm2533_vm8 = vcmp.gt.f32.partialorder %v2529_v4, 0.0 }
 0x4b9   : > { %v2535_v1 = vmin.f32 %v2527_v20, 0.0  ;;  %v2528_v23 = vadd.f32 %v4095_v61, %v2504_v62  ;;  %vm2531_vm10 = vcmp.gt.f32.partialorder %v2527_v20, 0.0 }
 0x4ba   : > { %v2543_v24 = vmul.f32 1.442695, %v2537_v22  ;;  %v2538_v25 = vmin.f32 %v2530_v60, 0.0  ;;  %vm2534_vm9 = vcmp.gt.f32.partialorder %v2530_v60, 0.0 }
 0x4bb   : > { %v2539_v26 = vmul.f32 1.442695, %v2535_v1  ;;  %v2536_v27 = vmin.f32 %v2528_v23, 0.0  ;;  %vm2532_vm11 = vcmp.gt.f32.partialorder %v2528_v23, 0.0  ;;  %v5095_v1 = vld [vmem:[#allocation5 + $0x18] sm:$0xff]  }
 0x4bc   : > { %5128 = vpow2.f32 %v2543_v24  ;;  %v2545_v28 = vmul.f32 1.442695, %v2538_v25  ;;  %v5096_v24 = vld [vmem:[#allocation5 + $0x40] sm:$0xff]  }
 0x4bd   : > { %5130 = vpow2.f32 %v2539_v26  ;;  %v2541_v29 = vmul.f32 1.442695, %v2536_v27 }
 0x4be   : > { %5132 = vpow2.f32 %v2545_v28 }
 0x4bf   : > { %5134 = vpow2.f32 %v2541_v29 }
 0x4c6   : > { %v5129_v30 = vpop.eup %5128 }
 0x4c7   : > { %v5131_v31 = vpop.eup %5130  ;;  %v4098_v32 = vadd.f32 -1.0, %v5129_v30  ;;  %v5097_v30 = vld [vmem:[#allocation5 + $0x48] sm:$0xff]  }
 0x4c8   : > { %v5133_v33 = vpop.eup %5132  ;;  %v4096_v34 = vadd.f32 -1.0, %v5131_v31 }
 0x4c9   : > { %v5135_v35 = vpop.eup %5134  ;;  %v4099_v36 = vadd.f32 -1.0, %v5133_v33  ;;  %v2553_v38 = vsel %vm2533_vm8, %v2529_v4, %v4098_v32  ;;  %v5098_v32 = vld [vmem:[#allocation5 + $0x50] sm:$0xff]  }
 0x4ca   : > { %v4097_v37 = vadd.f32 -1.0, %v5135_v35  ;;  %v2551_v0 = vsel %vm2531_vm10, %v2527_v20, %v4096_v34 }
 0x4cb   : > { %v2554_v39 = vsel %vm2534_vm9, %v2530_v60, %v4099_v36 }
 0x4cc   : > { %v2552_v40 = vsel %vm2532_vm11, %v2528_v23, %v4097_v37  ;;  %v2556_v41 = vpack.c.bf16 %v2554_v39, %v2553_v38  ;;  %v5099_v38 = vld [vmem:[#allocation5 + $0x58] sm:$0xff]  }
 0x4cd   : > { %v2555_v42 = vpack.c.bf16 %v2552_v40, %v2551_v0  ;;  %v5100_v0 = vld [vmem:[#allocation5 + $0x60] sm:$0xff]  }
 0x4cf   : > { %4691 = vmatprep.subr.bf16.mxu1 %v2555_v42 }
 0x4d0   : > { %4692 = vmatpush3.bf16.msra.mxu1 %v2555_v42 }
 0x4d1   : > { %4693 = vmatprep.subr.bf16.mxu1 %v2556_v41 }
 0x4d4   : > { %4694 = vmatpush3.bf16.msra.mxu1 %v2556_v41 }
 0x4d5   : > { %4731 = vmatprep.subr.bf16.mxu1 %v5088_v43 }
 0x4d7   : > { %4696 = vmatmul.mubr.msk.bf16.vlgmr.msra.gmra.mrb[28].mxu1 %vm2683_vm7, %v5071_v44 }
 0x4d8   : > { %4699 = vmatprep.mubr.msk.bf16.mxu1 %vm2683_vm7, %v5072_v45  ;;  %4732 = vmatpush3.bf16.msra.mxu1 %v5088_v43  ;;  %v5101_v45 = vld [vmem:[#allocation5 + $0x68] sm:$0xff]  }
 0x4d9   : > { %4733 = vmatprep.subr.bf16.mxu1 %v5089_v46 }
 0x4dc   : > { %4734 = vmatpush3.bf16.msra.mxu1 %v5089_v46 }
 0x4dd   : > { %4735 = vmatprep.subr.bf16.mxu1 %v5090_v47 }
 0x4df   : > { %4700 = vmatmul.mubr.msk.bf16.gmra.mrb[32].mxu1 %vm2683_vm7, %v5073_v48 }
 0x4e0   : > { %4703 = vmatprep.mubr.msk.bf16.mxu1 %vm2683_vm7, %v5074_v49  ;;  %4736 = vmatpush3.bf16.msra.mxu1 %v5090_v47  ;;  %v5102_v47 = vld [vmem:[#allocation5 + $0x70] sm:$0xff]  }
 0x4e1   : > { %4737 = vmatprep.subr.bf16.mxu1 %v5091_v50 }
 0x4e4   : > { %4738 = vmatpush3.bf16.msra.mxu1 %v5091_v50 }
 0x4e5   : > { %4743 = vmatprep.subr.bf16.mxu1 %v5092_v7 }
 0x4e7   : > { %4704 = vmatmul.mubr.msk.bf16.gmra.mrb[36].mxu1 %vm2683_vm7, %v5075_v51 }
 0x4e8   : > { %4707 = vmatprep.mubr.msk.bf16.mxu1 %vm2683_vm7, %v5076_v52 }
 0x4ef   : > { %4708 = vmatmul.mubr.msk.bf16.gmra.mrb[40].mxu1 %vm2683_vm7, %v5077_v53  ;;  %v5103_v53 = vld [vmem:[#allocation5 + $0x78] sm:$0xff]  }
 0x4f0   : > { %4711 = vmatprep.mubr.msk.bf16.mxu1 %vm2683_vm7, %v5078_v54 }
 0x4f7   : > { %4712 = vmatmul.mubr.msk.bf16.gmra.mrb[44].mxu1 %vm2683_vm7, %v5079_v55  ;;  %v5104_v55 = vld [vmem:[#allocation5 + $0x80] sm:$0xff]  }
 0x4f8   : > { %4715 = vmatprep.mubr.msk.bf16.mxu1 %vm2683_vm7, %v5080_v56 }
 0x4ff   : > { %4716 = vmatmul.mubr.msk.bf16.gmra.mrb[48].mxu1 %vm2683_vm7, %v5081_v57 }
 0x500   : > { %4719 = vmatprep.mubr.msk.bf16.mxu1 %vm2683_vm7, %v5082_v58 }
 0x507   : > { %4720 = vmatmul.mubr.msk.bf16.gmra.mrb[52].mxu1 %vm2683_vm7, %v5083_v59 }
 0x508   : > { %4723 = vmatprep.mubr.msk.bf16.mxu1 %vm2683_vm7, %v5084_v63 }
 0x50f   : > { %4724 = vmatmul.mubr.msk.bf16.gmra.mrb[56].mxu1 %vm2683_vm7, %v5085_v3  ;;  %v5105_v3 = vld [vmem:[#allocation5 + $0x88] sm:$0xff]  }
 0x510   : > { %4727 = vmatprep.mubr.msk.bf16.mxu1 %vm2683_vm7, %v5086_v5 }
 0x517   : > { %4728 = vmatmul.mubr.msk.bf16.gmra.mrb[60].mxu1 %vm2683_vm7, %v5087_v6  ;;  %v5106_v6 = vld [vmem:[#allocation5 + $0x90] sm:$0xff]  }
 0x5aa   : > { %v4697_v8 = vpop.f32.mrb[28].mxu1 }
 0x5ab   : > { %v2772_v9 = vpop.f32.mrb[29].mxu1 }
 0x5ac   : > { %v4698_v10 = vpop.f32.mrb[30].mxu1 }
 0x5ad   : > { %v2916_v11 = vpack.c.bf16 %v4698_v10, %v4697_v8  ;;  %v2775_v12 = vpop.f32.mrb[31].mxu1 }
 0x5ae   : > { %v2915_v13 = vpack.c.bf16 %v2775_v12, %v2772_v9  ;;  %v5107_v12 = vld [vmem:[#allocation5 + $0x98] sm:$0xff]  }
 0x5b2   : > { %v4701_v14 = vpop.f32.mrb[32].mxu1 }
 0x5b3   : > { %v2788_v15 = vpop.f32.mrb[33].mxu1 }
 0x5b4   : > { %v4702_v16 = vpop.f32.mrb[34].mxu1 }
 0x5b5   : > { %v2918_v17 = vpack.c.bf16 %v4702_v16, %v4701_v14  ;;  %v2791_v18 = vpop.f32.mrb[35].mxu1  ;;  %v5109_v14 = vld [vmem:[#allocation5 + $0xa8] sm:$0xff]   ;;  %v5111_v16 = vld [vmem:[#allocation5 + $0xb8] sm:$0xff]  }
 0x5b6   : > { %v2917_v61 = vpack.c.bf16 %v2791_v18, %v2788_v15  ;;  %v5110_v15 = vld [vmem:[#allocation5 + $0xb0] sm:$0xff]   ;;  %v5113_v18 = vld [vmem:[#allocation5 + $0xc8] sm:$0xff]  }
 0x5b8   : > { %4739 = vmatprep.mubr.msk.bf16.mxu1 %vm637_vm3, %v2917_v61  ;;  %v5114_v61 = vld [vmem:[#allocation5 + $0xd0] sm:$0xff]  }
 0x5b9   : > { %4740 = vmatmul.mubr.msk.bf16.vlgmr.msra.gmra.mrb[64].mxu1 %vm637_vm3, %v2918_v17  ;;  %v5112_v17 = vld [vmem:[#allocation5 + $0xc0] sm:$0xff]  }
 0x5ba   : > { %4744 = vmatpush3.bf16.msra.mxu1 %v5092_v7  ;;  %4751 = vmatprep.mubr.msk.bf16.mxu1 %vm637_vm3, %v2915_v13  ;;  %v4705_v4 = vpop.f32.mrb[36].mxu1  ;;  %v5108_v13 = vld [vmem:[#allocation5 + $0xa0] sm:$0xff]  }
 0x5bb   : > { %4745 = vmatprep.subr.bf16.mxu1 %v5093_v2  ;;  %v2804_v20 = vpop.f32.mrb[37].mxu1 }
 0x5bc   : > { %v4706_v21 = vpop.f32.mrb[38].mxu1 }
 0x5bd   : > { %v2920_v22 = vpack.c.bf16 %v4706_v21, %v4705_v4  ;;  %v2807_v60 = vpop.f32.mrb[39].mxu1  ;;  %v5116_v4 = vld [vmem:[#allocation5 + $0xe0] sm:$0xff]   ;;  %v5119_v21 = vld [vmem:[#allocation5 + $0xf8] sm:$0xff]  }
 0x5be   : > { %4746 = vmatpush3.bf16.msra.mxu1 %v5093_v2  ;;  %v2919_v62 = vpack.c.bf16 %v2807_v60, %v2804_v20  ;;  %v5115_v2 = vld [vmem:[#allocation5 + $0xd8] sm:$0xff]   ;;  %v5118_v20 = vld [vmem:[#allocation5 + $0xf0] sm:$0xff]   ;;  %v5121_v60 = vld [vmem:[#allocation5 + $0x108] sm:$0xff]  }
 0x5bf   : > { %4747 = vmatprep.subr.bf16.mxu1 %v5094_v19 }
 0x5c2   : > { %4748 = vmatpush3.bf16.msra.mxu1 %v5094_v19  ;;  %v5904_v23 = vpop.f32.mrb[40].mxu1  ;;  %v5117_v19 = vld [vmem:[#allocation5 + $0xe8] sm:$0xff]  }
 0x5c3   : > { %4749 = vmatprep.subr.bf16.mxu1 %v5095_v1  ;;  %v2820_v25 = vpop.f32.mrb[41].mxu1 }
 0x5c4   : > { %v4710_v26 = vpop.f32.mrb[42].mxu1 }
 0x5c5   : > { %v2922_v27 = vpack.c.bf16 %v4710_v26, %v5904_v23  ;;  %v2823_v28 = vpop.f32.mrb[43].mxu1  ;;  %v4190_v23 = vld [vmem:[%s6033_s9] ss:$0 sm:$0xff] }
 0x5c6   : > { %4750 = vmatpush3.bf16.msra.mxu1 %v5095_v1  ;;  %v2921_v29 = vpack.c.bf16 %v2823_v28, %v2820_v25  ;;  %v5123_v1 = vld [vmem:[#allocation5 + $0x118] sm:$0xff]  }
 0x5c7   : > { %4755 = vmatprep.subr.bf16.mxu1 %v5096_v24 }
 0x5c9   : > { %4752 = vmatmul.mubr.msk.bf16.vlgmr.msra.gmra.mrb[64].mxu1 %vm637_vm3, %v2916_v11 }
 0x5ca   : > { %4756 = vmatpush3.bf16.msra.mxu1 %v5096_v24  ;;  %4763 = vmatprep.mubr.msk.bf16.mxu1 %vm637_vm3, %v2919_v62  ;;  %v5909_v31 = vpop.f32.mrb[44].mxu1  ;;  %v5122_v62 = vld [vmem:[#allocation5 + $0x110] sm:$0xff]  }
 0x5cb   : > { %4757 = vmatprep.subr.bf16.mxu1 %v5097_v30  ;;  %v2836_v33 = vpop.f32.mrb[45].mxu1 }
 0x5cc   : > { %v5911_v34 = vpop.f32.mrb[46].mxu1 }
 0x5cd   : > { %v2924_v35 = vpack.c.bf16 %v5911_v34, %v5909_v31  ;;  %v2839_v36 = vpop.f32.mrb[47].mxu1 }
 0x5ce   : > { %4758 = vmatpush3.bf16.msra.mxu1 %v5097_v30  ;;  %v2923_v37 = vpack.c.bf16 %v2839_v36, %v2836_v33 }
 0x5cf   : > { %4759 = vmatprep.subr.bf16.mxu1 %v5098_v32 }
 0x5d2   : > { %4760 = vmatpush3.bf16.msra.mxu1 %v5098_v32  ;;  %v5915_v39 = vpop.f32.mrb[48].mxu1 }
 0x5d3   : > { %4761 = vmatprep.subr.bf16.mxu1 %v5099_v38  ;;  %v2852_v40 = vpop.f32.mrb[49].mxu1 }
 0x5d4   : > { %v5917_v41 = vpop.f32.mrb[50].mxu1 }
 0x5d5   : > { %v2926_v42 = vpack.c.bf16 %v5917_v41, %v5915_v39  ;;  %v2855_v43 = vpop.f32.mrb[51].mxu1 }
 0x5d6   : > { %4762 = vmatpush3.bf16.msra.mxu1 %v5099_v38  ;;  %v2925_v44 = vpack.c.bf16 %v2855_v43, %v2852_v40 }
 0x5d7   : > { %4767 = vmatprep.subr.bf16.mxu1 %v5100_v0 }
 0x5d9   : > { %4764 = vmatmul.mubr.msk.bf16.vlgmr.msra.gmra.mrb[64].mxu1 %vm637_vm3, %v2920_v22  ;;  %v5120_v22 = vld [vmem:[#allocation5 + $0x100] sm:$0xff]  }
 0x5da   : > { %4768 = vmatpush3.bf16.msra.mxu1 %v5100_v0  ;;  %4775 = vmatprep.mubr.msk.bf16.mxu1 %vm637_vm3, %v2921_v29  ;;  %v5923_v46 = vpop.f32.mrb[52].mxu1 }
 0x5db   : > { %4769 = vmatprep.subr.bf16.mxu1 %v5101_v45  ;;  %v2868_v48 = vpop.f32.mrb[53].mxu1 }
 0x5dc   : > { %v5925_v49 = vpop.f32.mrb[54].mxu1 }
 0x5dd   : > { %v2928_v50 = vpack.c.bf16 %v5925_v49, %v5923_v46  ;;  %v2871_v51 = vpop.f32.mrb[55].mxu1 }
 0x5de   : > { %4770 = vmatpush3.bf16.msra.mxu1 %v5101_v45  ;;  %v2927_v52 = vpack.c.bf16 %v2871_v51, %v2868_v48 }
 0x5df   : > { %4771 = vmatprep.subr.bf16.mxu1 %v5102_v47 }
 0x5e2   : > { %4772 = vmatpush3.bf16.msra.mxu1 %v5102_v47  ;;  %v5929_v54 = vpop.f32.mrb[56].mxu1 }
 0x5e3   : > { %4773 = vmatprep.subr.bf16.mxu1 %v5103_v53  ;;  %v2884_v56 = vpop.f32.mrb[57].mxu1 }
 0x5e4   : > { %v5931_v57 = vpop.f32.mrb[58].mxu1 }
 0x5e5   : > { %v2930_v58 = vpack.c.bf16 %v5931_v57, %v5929_v54  ;;  %v2887_v59 = vpop.f32.mrb[59].mxu1 }
 0x5e6   : > { %4774 = vmatpush3.bf16.msra.mxu1 %v5103_v53  ;;  %v2929_v63 = vpack.c.bf16 %v2887_v59, %v2884_v56 }
 0x5e7   : > { %4779 = vmatprep.subr.bf16.mxu1 %v5104_v55 }
 0x5e9   : > { %4776 = vmatmul.mubr.msk.bf16.vlgmr.msra.gmra.mrb[64].mxu1 %vm637_vm3, %v2922_v27 }
 0x5ea   : > { %4780 = vmatpush3.bf16.msra.mxu1 %v5104_v55  ;;  %4787 = vmatprep.mubr.msk.bf16.mxu1 %vm637_vm3, %v2923_v37  ;;  %v5937_v5 = vpop.f32.mrb[60].mxu1 }
 0x5eb   : > { %4781 = vmatprep.subr.bf16.mxu1 %v5105_v3  ;;  %v2900_v7 = vpop.f32.mrb[61].mxu1 }
 0x5ec   : > { %v5939_v8 = vpop.f32.mrb[62].mxu1 }
 0x5ed   : > { %v2932_v9 = vpack.c.bf16 %v5939_v8, %v5937_v5  ;;  %v2903_v10 = vpop.f32.mrb[63].mxu1 }
 0x5ee   : > { %4782 = vmatpush3.bf16.msra.mxu1 %v5105_v3  ;;  %v2931_v11 = vpack.c.bf16 %v2903_v10, %v2900_v7 }
 0x5ef   : > { %4783 = vmatprep.subr.bf16.mxu1 %v5106_v6 }
 0x5f2   : > { %4784 = vmatpush3.bf16.msra.mxu1 %v5106_v6 }
 0x5f3   : > { %4785 = vmatprep.subr.bf16.mxu1 %v5107_v12 }
 0x5f6   : > { %4786 = vmatpush3.bf16.msra.mxu1 %v5107_v12 }
 0x5f7   : > { %4791 = vmatprep.subr.bf16.mxu1 %v5108_v13 }
 0x5f9   : > { %4788 = vmatmul.mubr.msk.bf16.vlgmr.msra.gmra.mrb[64].mxu1 %vm637_vm3, %v2924_v35 }
 0x5fa   : > { %4792 = vmatpush3.bf16.msra.mxu1 %v5108_v13  ;;  %4799 = vmatprep.mubr.msk.bf16.mxu1 %vm637_vm3, %v2925_v44 }
 0x5fb   : > { %4793 = vmatprep.subr.bf16.mxu1 %v5109_v14 }
 0x5fe   : > { %4794 = vmatpush3.bf16.msra.mxu1 %v5109_v14 }
 0x5ff   : > { %4795 = vmatprep.subr.bf16.mxu1 %v5110_v15 }
 0x602   : > { %4796 = vmatpush3.bf16.msra.mxu1 %v5110_v15 }
 0x603   : > { %4797 = vmatprep.subr.bf16.mxu1 %v5111_v16 }
 0x606   : > { %4798 = vmatpush3.bf16.msra.mxu1 %v5111_v16 }
 0x607   : > { %4803 = vmatprep.subr.bf16.mxu1 %v5112_v17 }
 0x609   : > { %4800 = vmatmul.mubr.msk.bf16.vlgmr.msra.gmra.mrb[64].mxu1 %vm637_vm3, %v2926_v42 }
 0x60a   : > { %4804 = vmatpush3.bf16.msra.mxu1 %v5112_v17  ;;  %4811 = vmatprep.mubr.msk.bf16.mxu1 %vm637_vm3, %v2927_v52 }
 0x60b   : > { %4805 = vmatprep.subr.bf16.mxu1 %v5113_v18 }
 0x60e   : > { %4806 = vmatpush3.bf16.msra.mxu1 %v5113_v18 }
 0x60f   : > { %4807 = vmatprep.subr.bf16.mxu1 %v5114_v61 }
 0x612   : > { %4808 = vmatpush3.bf16.msra.mxu1 %v5114_v61 }
 0x613   : > { %4809 = vmatprep.subr.bf16.mxu1 %v5115_v2 }
 0x616   : > { %4810 = vmatpush3.bf16.msra.mxu1 %v5115_v2 }
 0x617   : > { %4815 = vmatprep.subr.bf16.mxu1 %v5116_v4 }
 0x619   : > { %4812 = vmatmul.mubr.msk.bf16.vlgmr.msra.gmra.mrb[64].mxu1 %vm637_vm3, %v2928_v50 }
 0x61a   : > { %4816 = vmatpush3.bf16.msra.mxu1 %v5116_v4  ;;  %4823 = vmatprep.mubr.msk.bf16.mxu1 %vm637_vm3, %v2929_v63 }
 0x61b   : > { %4817 = vmatprep.subr.bf16.mxu1 %v5117_v19 }
 0x61e   : > { %4818 = vmatpush3.bf16.msra.mxu1 %v5117_v19 }
 0x61f   : > { %4819 = vmatprep.subr.bf16.mxu1 %v5118_v20 }
 0x622   : > { %4820 = vmatpush3.bf16.msra.mxu1 %v5118_v20 }
 0x623   : > { %4821 = vmatprep.subr.bf16.mxu1 %v5119_v21 }
 0x626   : > { %4822 = vmatpush3.bf16.msra.mxu1 %v5119_v21 }
 0x627   : > { %4827 = vmatprep.subr.bf16.mxu1 %v5120_v22 }
 0x629   : > { %4824 = vmatmul.mubr.msk.bf16.vlgmr.msra.gmra.mrb[64].mxu1 %vm637_vm3, %v2930_v58 }
 0x62a   : > { %4828 = vmatpush3.bf16.msra.mxu1 %v5120_v22  ;;  %4835 = vmatprep.mubr.msk.bf16.mxu1 %vm637_vm3, %v2931_v11 }
 0x62b   : > { %4829 = vmatprep.subr.bf16.mxu1 %v5121_v60 }
 0x62e   : > { %4830 = vmatpush3.bf16.msra.mxu1 %v5121_v60 }
 0x62f   : > { %4831 = vmatprep.subr.bf16.mxu1 %v5122_v62 }
 0x632   : > { %4832 = vmatpush3.bf16.msra.mxu1 %v5122_v62 }
 0x633   : > { %4833 = vmatprep.subr.bf16.mxu1 %v5123_v1 }
 0x636   : > { %4834 = vmatpush3.bf16.msra.mxu1 %v5123_v1 }
 0x639   : > { %4836 = vmatmul.mubr.msk.bf16.vlgmr.msra.gmra.mrb[64].mxu1 %vm637_vm3, %v2932_v9 }
 0x70c   : > { %v4837_v24 = vpop.f32.mrb[64].mxu1 }
 0x70d   : > { %v3761_v25 = vadd.f32 %v4837_v24, %v4190_v23  ;;  %v3733_v26 = vpop.f32.mrb[65].mxu1 }
 0x70e   : > { %v3759_v27 = vadd.f32 %v4190_v23, %v3733_v26  ;;  %v4838_v28 = vpop.f32.mrb[66].mxu1 }
 0x70f   : > { %3765 = vst.msk [vmem:[%s380_s26 + $0x10] sm:$0xff] %vm637_vm3, %v3761_v25  ;;  %v3762_v29 = vadd.f32 %v4838_v28, %v4190_v23  ;;  %v3736_v30 = vpop.f32.mrb[67].mxu1 }
 0x710   : > { %3763 = vst.msk [vmem:[%s380_s26] sm:$0xff] %vm637_vm3, %v3759_v27  ;;  %v3760_v31 = vadd.f32 %v4190_v23, %v3736_v30 }
 0x711   : > { %3766 = vst.msk [vmem:[%s380_s26 + $0x18] sm:$0xff] %vm637_vm3, %v3762_v29 }
 0x712   : > { %3764 = vst.msk [vmem:[%s380_s26 + $0x8] sm:$0xff] %vm637_vm3, %v3760_v31 }
 0x713   : > { %5205 = shalt.err (!%p5202_p11)
}
 0x714   : > { %s5206_s12 = scalar_lea.hbm %s5978_s24, 512  ;;  %s5210_s20 = scalar_lea.hbm %s6034_s10, 1024 }
 0x715   : > { %p5207_p13 = scmp.ne.s32.totalorder %s5978_s24, %s5206_s12  ;;  %p5211_p6 = scmp.lt.u32.totalorder %s5978_s24, %s6034_s10 }
 0x716   : > { %p5212_p9 = scmp.lt.u32.totalorder %s5210_s20, %s5206_s12  ;;  %p5214_p12 = scmp.lt.u32.totalorder %s5206_s12, %s5978_s24 }
 0x717   : > { %p5208_p5 = pnand %p5207_p13, %p6055_p1 }
 0x718   : > { %p5213_p10 = por %p5212_p9, %p5211_p6 }
 0x719   : > { %p5209_p0 = pneg %p5208_p5 }
 0x71a   : > { %p5215_p2 = por %p5214_p12, %p5213_p10 }
 0x71c   : > { %p5216_p3 = pnand %p5215_p2, %p5209_p0 }
 0x71e   : > { %5219 = shalt.err (!%p5216_p3)
}
 0x71f   : > { %s5271_s27 = smov 128   ;;  %s5272_s15 = smov 8  }
 0x720   : > { %4913 = dma.vmem_to_hbm [thread:$0]  (%p6055_p1), %s5973_s29, 512, %s5978_s24, %s5983_s17, %s5271_s27, %s5271_s27, %s5272_s15  }
 0x721 PF: > { %s6056_s19 = sld [smem:[#allocation14_spill]]  ;;  %p4930_p4 = scmp.ge.s32.totalorder %s5262_s16, 2 }
 0x722   : > { %s3796_s25 = sand.u32 1, %s5250_s13  }
 0x723   : > { %s3797_s28 = scalar_lea.sflag [#allocation4], %s3796_s25 }
 0x727   : > { %p6057_p7 = scmp.ne.s32.totalorder %s6056_s19, 0 }
 0x729   : > { %p4923_p8 = pnand %p4930_p4, %p6057_p7 }
 0x72b   : > { %5245 = dma.done.wait (!%p4923_p8), %s3797_s28, 512  }
 0x72c   : > { %5247 = vsyncadd (!%p4923_p8), %s3797_s28, 4294966784  ;;  %s6058_s16 = sld [smem:[#allocation12_spill]]  ;;  %s6059_s30 = sld [smem:[#allocation11_spill]] }
 0x72d   : > { %s6060_s15 = sld [smem:[#allocation13_spill]]  ;;  %s6061_s13 = smov %s5254_s14 }
 0x732   : > { %p22_p11 = scmp.ge.s32.totalorder %s6058_s16, 4   ;;  %s6062_s14 = smov %s6059_s30 }
 0x734   :  { %24 = sbr.rel (!%p22_p11) target bundleno = 5 (0x5), region = 128 }
 0x73b   :  { %3802 = vsyncpa [#allocation3], 1 }
 0x73c   :  { %3804 = vsyncpa [#allocation3 + $0x1], 1 }
 0x73d   :  { %3805 = vsyncpa [#allocation6], 1 }
 0x73e   :  { %3806 = vsyncpa [#allocation4], 1 }
 0x73f   :  { %3808 = vsyncpa [#allocation4 + $0x1], 1 }

</bundles_post_ra>
